<compile_context>
chip_gen: v5e
topology: v5e:2x2
jax: 0.10.0
libtpu: 0.0.40
codegen_flags: <defaults>
</compile_context>

<pallas_src>
import math
import jax
import jax.numpy as jnp
import numpy as np
from jax.experimental import pallas as pl
from jax.experimental.pallas import tpu as pltpu

# ----------------------------- model config (small) -------------------------
IN_CHANNELS = 4
OUT_CHANNELS = 1
NUM_LAYERS = 6
NUM_STACKS = 3
KERNEL_SIZE = 3
RESIDUAL_CHANNELS = 32
GATE_CHANNELS = 32
SKIP_CHANNELS = 32
LAST_CHANNELS = (64, 32)
TARGET_FIELD_LENGTH = 8

LAYERS_PER_STACK = NUM_LAYERS // NUM_STACKS
DILATIONS = [2 ** (l % LAYERS_PER_STACK) for l in range(NUM_LAYERS)]
SQRT_HALF = math.sqrt(0.5)
GH = GATE_CHANNELS // 2

# Lane width per grid step: up to 512 chunks (4096 lanes).  Peak live f32 per
# tile is a few MiB -> comfortably inside the 32 MiB scoped VMEM budget and
# v7x's 64 MiB physical VMEM.
MAX_TILE_LANES = 512 * TARGET_FIELD_LENGTH

# bf16 matmul operands: ~2x MXU on v6e/v7x, ~3x on v5e (no native f32 MXU
# path); accumulation stays f32 via preferred_element_type.
MATMUL_DTYPE = jnp.bfloat16

assert max(DILATIONS) < TARGET_FIELD_LENGTH
assert 128 % TARGET_FIELD_LENGTH == 0


# ----------------------------- small helpers --------------------------------
def _mm(w, h):
    """Channels-first matmul W(Cout,K) @ H(K,N) with f32 accumulation."""
    return jnp.dot(w.astype(MATMUL_DTYPE), h.astype(MATMUL_DTYPE),
                   preferred_element_type=jnp.float32)


def _round_up(x, m):
    return ((x + m - 1) // m) * m


# ----------------------------- kernel ----------------------------------------
def dwavenet_tile_kernel(x_ref, fw_ref, cw_ref, sow_ref,
                         lw1_ref, lw2_ref, lw3_ref, lb3_ref, o_ref):
    tfl = TARGET_FIELD_LENGTH
    _, tn = x_ref.shape                               # (Cin, tile lanes)

    # 0/1 lane masks implementing the per-chunk zero padding of the k=3 convs
    # (time-in-chunk index t = lane % tfl).  Hoisted out of the layer loop.
    t_mod = jax.lax.broadcasted_iota(jnp.int32, (1, tn), 1) % tfl
    dil_set = sorted(set(DILATIONS) | {1})
    prev_mask = {d: (t_mod >= d).astype(jnp.float32) for d in dil_set}
    next_mask = {d: (t_mod < tfl - d).astype(jnp.float32) for d in dil_set}

    def conv3(h, w3, d):
        """Dilated conv1d, k=3, per-chunk 'same' zero padding, channels-first.
        h: (Cin, tn) f32;  w3: (3, Cout, Cin) taps [prev, center, next]."""
        h_prev = pltpu.roll(h, d, axis=1) * prev_mask[d]        # h[t-d], 0 if t < d
        h_next = pltpu.roll(h, tn - d, axis=1) * next_mask[d]   # h[t+d], 0 if t >= tfl-d
        return _mm(w3[0], h_prev) + _mm(w3[1], h) + _mm(w3[2], h_next)

    x = x_ref[...].astype(jnp.float32)                # (Cin, tn)

    # first_conv: Conv1d(Cin, R, 3, padding=1, bias=False)
    h = conv3(x, fw_ref[...], 1)                      # (R, tn)

    skips = jnp.zeros((SKIP_CHANNELS, tn), jnp.float32)

    # residual dilated conv + GLU stack (statically unrolled)
    for l, d in enumerate(DILATIONS):
        residual = h
        y = conv3(h, cw_ref[l], d)                    # (G, tn)
        z = jnp.tanh(y[:GH]) * jax.nn.sigmoid(y[GH:]) # sublane-aligned GLU split
        so = _mm(sow_ref[l], z)                       # (S+R, tn) fused skip/out 1x1
        skips = skips + so[:SKIP_CHANNELS]
        h = (so[SKIP_CHANNELS:] + residual) * SQRT_HALF

    # last_conv_layers: ReLU, conv3(S->LC0), ReLU, conv3(LC0->LC1), 1x1(+bias)
    y = jnp.maximum(skips, 0.0)
    y = conv3(y, lw1_ref[...], 1)
    y = jnp.maximum(y, 0.0)
    y = conv3(y, lw2_ref[...], 1)
    out = _mm(lw3_ref[...], y) + lb3_ref[...]         # (OC, tn), lane-dense
    o_ref[...] = out.astype(o_ref.dtype)


# ----------------------------- wrapper ----------------------------------------
def _choose_time_tile(T_total):
    """Return (tile lane width, padded T): tile width is a multiple of 128 (so
    the lane axis is vreg-aligned for roll / lane-dense stores) and of tfl (so
    chunks never straddle tiles); no divisibility of the chunk count needed."""
    if T_total <= MAX_TILE_LANES:
        tn = _round_up(T_total, 128)
        return tn, tn
    n_tiles = -(-T_total // MAX_TILE_LANES)
    tn = _round_up(-(-T_total // n_tiles), 128)
    return tn, tn * n_tiles


def _pack_params(params):
    """Host-side repack to channels-first (Cout, Cin) taps + fused skip/out 1x1,
    pre-cast to the matmul dtype (bias stays f32 — it is added post-matmul)."""
    t = lambda w: jnp.swapaxes(w, -1, -2).astype(MATMUL_DTYPE)
    so = jnp.concatenate([params["skip_w"], params["out_w"]], axis=-1)  # (L,GH,S+R)
    return dict(
        first_w=t(params["first_w"]),          # (3, R, Cin)
        conv_w=t(params["conv_w"]),            # (L, 3, G, R)
        so_w=t(so),                            # (L, S+R, GH)
        last_w1=t(params["last_w1"]),          # (3, LC0, S)
        last_w2=t(params["last_w2"]),          # (3, LC1, LC0)
        last_w3=t(params["last_w3"]),          # (OC, LC1)
        last_b3=jnp.swapaxes(params["last_b3"], -1, -2).astype(jnp.float32),  # (OC,1)
    )


def dwavenet_forward(x, params):
    """x: (B, C_in, T_total) float32 (native PyTorch NCT). Returns (B, OC, T_total)."""
    B, Cin, T_total = x.shape
    tfl = TARGET_FIELD_LENGTH
    assert Cin == IN_CHANNELS
    assert T_total % tfl == 0, "T must be a multiple of target_field_length"

    tn, T_pad = _choose_time_tile(T_total)
    x_f = x.astype(jnp.float32)
    if T_pad != T_total:
        # Pad with whole zero chunks; their outputs are sliced off below.
        x_f = jnp.pad(x_f, ((0, 0), (0, 0), (0, T_pad - T_total)))

    pk = _pack_params(params)
    grid = (B, T_pad // tn)

    def full_spec(arr):
        nd = arr.ndim
        return pl.BlockSpec(arr.shape, lambda b, t, _nd=nd: (0,) * _nd)

    macs_per_pos = (3 * Cin * RESIDUAL_CHANNELS
                    + NUM_LAYERS * (3 * RESIDUAL_CHANNELS * GATE_CHANNELS
                                    + GH * (SKIP_CHANNELS + RESIDUAL_CHANNELS))
                    + 3 * SKIP_CHANNELS * LAST_CHANNELS[0]
                    + 3 * LAST_CHANNELS[0] * LAST_CHANNELS[1]
                    + LAST_CHANNELS[1] * OUT_CHANNELS)
    n_pos = B * T_pad
    weight_bytes = sum(int(w.size) * w.dtype.itemsize for w in pk.values())
    cost = pl.CostEstimate(
        flops=2 * macs_per_pos * n_pos,
        transcendentals=2 * NUM_LAYERS * GH * n_pos,
        bytes_accessed=int(x_f.size) * 4 + n_pos * OUT_CHANNELS * 4 + weight_bytes)

    out = pl.pallas_call(
        dwavenet_tile_kernel,
        out_shape=jax.ShapeDtypeStruct((B, OUT_CHANNELS, T_pad), jnp.float32),
        grid=grid,
        in_specs=[
            pl.BlockSpec((None, Cin, tn), lambda b, t: (b, 0, t)),
            full_spec(pk["first_w"]),
            full_spec(pk["conv_w"]),
            full_spec(pk["so_w"]),
            full_spec(pk["last_w1"]),
            full_spec(pk["last_w2"]),
            full_spec(pk["last_w3"]),
            full_spec(pk["last_b3"]),
        ],
        out_specs=pl.BlockSpec((None, OUT_CHANNELS, tn), lambda b, t: (b, 0, t)),
        compiler_params=pltpu.CompilerParams(
            dimension_semantics=("parallel", "parallel"),
            vmem_limit_bytes=32 * 1024 * 1024),
        cost_estimate=cost,
    )(x_f, pk["first_w"], pk["conv_w"], pk["so_w"],
      pk["last_w1"], pk["last_w2"], pk["last_w3"], pk["last_b3"])

    return out[:, :, :T_total]            # output already in (B, OC, T) layout


# ----------------------------- pure-JAX reference ----------------------------
def _mm_ref(a, b):
    # Same bf16-operand / f32-accumulate contract as the kernel's matmuls.
    return jnp.dot(a.astype(MATMUL_DTYPE), b.astype(MATMUL_DTYPE),
                   preferred_element_type=jnp.float32)


def _conv3_same_ref(x, w, d):
    T = x.shape[0]
    zpad = jnp.zeros((d, x.shape[1]), x.dtype)
    x_prev = jnp.concatenate([zpad, x[: T - d]], axis=0)
    x_next = jnp.concatenate([x[d:], zpad], axis=0)
    return _mm_ref(x_prev, w[0]) + _mm_ref(x, w[1]) + _mm_ref(x_next, w[2])


def dwavenet_ref(x, params):
    B, Cin, T_total = x.shape
    tfl = TARGET_FIELD_LENGTH
    n_chunks = T_total // tfl
    xc = (x.reshape(B, Cin, n_chunks, tfl)
           .transpose(0, 2, 3, 1)
           .reshape(B * n_chunks, tfl, Cin)).astype(jnp.float32)

    def one_chunk(xchunk):
        h = _conv3_same_ref(xchunk, params["first_w"], 1)
        skips = jnp.zeros((tfl, SKIP_CHANNELS), jnp.float32)
        for l, d in enumerate(DILATIONS):
            residual = h
            y = _conv3_same_ref(h, params["conv_w"][l], d)
            z = jnp.tanh(y[:, :GH]) * jax.nn.sigmoid(y[:, GH:])
            skips = skips + _mm_ref(z, params["skip_w"][l])
            h = (_mm_ref(z, params["out_w"][l]) + residual) * SQRT_HALF
        y = jnp.maximum(skips, 0.0)
        y = _conv3_same_ref(y, params["last_w1"], 1)
        y = jnp.maximum(y, 0.0)
        y = _conv3_same_ref(y, params["last_w2"], 1)
        return _mm_ref(y, params["last_w3"]) + params["last_b3"]

    out = jax.vmap(one_chunk)(xc)
    return (out.reshape(B, n_chunks, tfl, OUT_CHANNELS)
               .transpose(0, 3, 1, 2)
               .reshape(B, OUT_CHANNELS, T_total))


# ----------------------------- params ----------------------------------------
def init_params(key):
    ks = jax.random.split(key, 8)

    def w(k, shape, fan_in):
        return jax.random.normal(k, shape, jnp.float32) / math.sqrt(fan_in)

    return {
        # weights stored as (..., kernel_pos, C_in, C_out); bias only on last 1x1
        "first_w": w(ks[0], (3, IN_CHANNELS, RESIDUAL_CHANNELS), 3 * IN_CHANNELS),
        "conv_w":  w(ks[1], (NUM_LAYERS, 3, RESIDUAL_CHANNELS, GATE_CHANNELS),
                     3 * RESIDUAL_CHANNELS),
        "skip_w":  w(ks[2], (NUM_LAYERS, GH, SKIP_CHANNELS), GH),
        "out_w":   w(ks[3], (NUM_LAYERS, GH, RESIDUAL_CHANNELS), GH),
        "last_w1": w(ks[4], (3, SKIP_CHANNELS, LAST_CHANNELS[0]), 3 * SKIP_CHANNELS),
        "last_w2": w(ks[5], (3, LAST_CHANNELS[0], LAST_CHANNELS[1]),
                     3 * LAST_CHANNELS[0]),
        "last_w3": w(ks[6], (LAST_CHANNELS[1], OUT_CHANNELS), LAST_CHANNELS[1]),
        "last_b3": 0.1 * jax.random.normal(ks[7], (1, OUT_CHANNELS), jnp.float32),
    }


# ----------------------------- main -------------------------------------------
if __name__ == "__main__":
    key = jax.random.PRNGKey(0)
    kp, kx = jax.random.split(key)
    params = init_params(kp)

    B, T_total = 2, 16  # two chunks of TARGET_FIELD_LENGTH=8 per audio
    x = jax.random.normal(kx, (B, IN_CHANNELS, T_total), jnp.float32)

    y = jax.block_until_ready(dwavenet_forward(x, params))
    y_ref = jax.block_until_ready(dwavenet_ref(x, params))

    assert y.shape == (B, OUT_CHANNELS, T_total), y.shape
    err = float(np.max(np.abs(np.asarray(y) - np.asarray(y_ref))))
    # Both paths use bf16 matmul operands with f32 accumulation; the tolerance
    # absorbs EUP-vs-XLA transcendental and bf16 rounding-order differences.
    assert np.allclose(np.asarray(y), np.asarray(y_ref), atol=1e-2, rtol=1e-2), err

    print("KERNEL_OK")
</pallas_src>

<mosaic_0001>
module attributes {stable_mosaic.version = 11 : i64} {
  func.func @dwavenet_tile_kernel(%arg0: i32, %arg1: i32, %arg2: memref<1x4x128xf32, #tpu.memory_space<vmem>>, %arg3: memref<3x32x4xbf16, #tpu.memory_space<vmem>>, %arg4: memref<6x3x32x32xbf16, #tpu.memory_space<vmem>>, %arg5: memref<6x64x16xbf16, #tpu.memory_space<vmem>>, %arg6: memref<3x64x32xbf16, #tpu.memory_space<vmem>>, %arg7: memref<3x32x64xbf16, #tpu.memory_space<vmem>>, %arg8: memref<1x32xbf16, #tpu.memory_space<vmem>>, %arg9: memref<1x1xf32, #tpu.memory_space<vmem>>, %arg10: memref<1x1x128xf32, #tpu.memory_space<vmem>>) attributes {dimension_semantics = [#tpu.dimension_semantics<parallel>, #tpu.dimension_semantics<parallel>], iteration_bounds = array<i64: 2, 1>, scalar_prefetch = 0 : i64, scratch_operands = 0 : i64, tpu.core_type = #tpu.core_type<tc>, window_params = [{transform_indices = @transform_0, window_bounds = array<i64: 1, 4, 128>}, {pipeline_mode = #tpu.pipeline_mode<synchronous>, transform_indices = @transform_1, window_bounds = array<i64: 3, 32, 4>}, {pipeline_mode = #tpu.pipeline_mode<synchronous>, transform_indices = @transform_2, window_bounds = array<i64: 6, 3, 32, 32>}, {pipeline_mode = #tpu.pipeline_mode<synchronous>, transform_indices = @transform_3, window_bounds = array<i64: 6, 64, 16>}, {pipeline_mode = #tpu.pipeline_mode<synchronous>, transform_indices = @transform_4, window_bounds = array<i64: 3, 64, 32>}, {pipeline_mode = #tpu.pipeline_mode<synchronous>, transform_indices = @transform_5, window_bounds = array<i64: 3, 32, 64>}, {pipeline_mode = #tpu.pipeline_mode<synchronous>, transform_indices = @transform_6, window_bounds = array<i64: 1, 32>}, {pipeline_mode = #tpu.pipeline_mode<synchronous>, transform_indices = @transform_7, window_bounds = array<i64: 1, 1>}, {transform_indices = @transform_8, window_bounds = array<i64: 1, 1, 128>}]} {
    %0 = tpu.iota {dimensions = array<i32: 1>} : vector<1x128xi32>
    %c8_i32 = arith.constant 8 : i32
    %c0_i32 = arith.constant 0 : i32
    %1 = arith.cmpi eq, %c8_i32, %c0_i32 : i32
    %c1_i32 = arith.constant 1 : i32
    %2 = arith.select %1, %c1_i32, %c8_i32 : i32
    %3 = vector.broadcast %2 : i32 to vector<1x128xi32>
    %4 = arith.remsi %0, %3 : vector<1x128xi32>
    %c0_i32_0 = arith.constant 0 : i32
    %5 = vector.broadcast %c0_i32_0 : i32 to vector<1x128xi32>
    %6 = arith.cmpi ne, %4, %5 : vector<1x128xi32>
    %c0_i32_1 = arith.constant 0 : i32
    %7 = vector.broadcast %c0_i32_1 : i32 to vector<1x128xi32>
    %8 = arith.cmpi slt, %4, %7 : vector<1x128xi32>
    %c0_i32_2 = arith.constant 0 : i32
    %9 = arith.cmpi slt, %2, %c0_i32_2 : i32
    %10 = vector.broadcast %9 : i1 to vector<1x128xi1>
    %11 = vector.broadcast %10 : vector<1x128xi1> to vector<1x128xi1>
    %12 = arith.xori %8, %11 : vector<1x128xi1>
    %13 = arith.andi %12, %6 : vector<1x128xi1>
    %14 = vector.broadcast %2 : i32 to vector<1x128xi32>
    %15 = arith.addi %4, %14 : vector<1x128xi32>
    %16 = arith.select %13, %15, %4 : vector<1x128xi1>, vector<1x128xi32>
    %c1_i32_3 = arith.constant 1 : i32
    %17 = vector.broadcast %c1_i32_3 : i32 to vector<1x128xi32>
    %18 = arith.cmpi sge, %16, %17 : vector<1x128xi32>
    %19 = arith.extui %18 : vector<1x128xi1> to vector<1x128xi32>
    %20 = arith.sitofp %19 : vector<1x128xi32> to vector<1x128xf32>
    %c2_i32 = arith.constant 2 : i32
    %21 = vector.broadcast %c2_i32 : i32 to vector<1x128xi32>
    %22 = arith.cmpi sge, %16, %21 : vector<1x128xi32>
    %23 = arith.extui %22 : vector<1x128xi1> to vector<1x128xi32>
    %24 = arith.sitofp %23 : vector<1x128xi32> to vector<1x128xf32>
    %c7_i32 = arith.constant 7 : i32
    %25 = vector.broadcast %c7_i32 : i32 to vector<1x128xi32>
    %26 = arith.cmpi slt, %16, %25 : vector<1x128xi32>
    %27 = arith.extui %26 : vector<1x128xi1> to vector<1x128xi32>
    %28 = arith.sitofp %27 : vector<1x128xi32> to vector<1x128xf32>
    %c6_i32 = arith.constant 6 : i32
    %29 = vector.broadcast %c6_i32 : i32 to vector<1x128xi32>
    %30 = arith.cmpi slt, %16, %29 : vector<1x128xi32>
    %31 = arith.extui %30 : vector<1x128xi1> to vector<1x128xi32>
    %32 = arith.sitofp %31 : vector<1x128xi32> to vector<1x128xf32>
    %c0 = arith.constant 0 : index
    %c0_4 = arith.constant 0 : index
    %c0_5 = arith.constant 0 : index
    %33 = vector.load %arg2[%c0, %c0_4, %c0_5] : memref<1x4x128xf32, #tpu.memory_space<vmem>>, vector<1x4x128xf32>
    %34 = vector.shape_cast %33 : vector<1x4x128xf32> to vector<4x128xf32>
    %c0_6 = arith.constant 0 : index
    %c0_7 = arith.constant 0 : index
    %c0_8 = arith.constant 0 : index
    %35 = vector.load %arg3[%c0_6, %c0_7, %c0_8] : memref<3x32x4xbf16, #tpu.memory_space<vmem>>, vector<3x32x4xbf16>
    %c1_i32_9 = arith.constant 1 : i32
    %36 = tpu.dynamic_rotate %34 by %c1_i32_9 dim 1 : vector<4x128xf32>, i32 -> vector<4x128xf32>
    %37 = vector.broadcast %20 : vector<1x128xf32> to vector<4x128xf32>
    %38 = arith.mulf %36, %37 : vector<4x128xf32>
    %c127_i32 = arith.constant 127 : i32
    %39 = tpu.dynamic_rotate %34 by %c127_i32 dim 1 : vector<4x128xf32>, i32 -> vector<4x128xf32>
    %40 = vector.broadcast %28 : vector<1x128xf32> to vector<4x128xf32>
    %41 = arith.mulf %39, %40 : vector<4x128xf32>
    %42 = vector.extract_strided_slice %35 {offsets = [0, 0, 0], sizes = [1, 32, 4], strides = [1, 1, 1]} : vector<3x32x4xbf16> to vector<1x32x4xbf16>
    %43 = vector.shape_cast %42 : vector<1x32x4xbf16> to vector<32x4xbf16>
    %44 = arith.truncf %38 : vector<4x128xf32> to vector<4x128xbf16>
    %cst = arith.constant dense<0.000000e+00> : vector<32x128xf32>
    %45 = tpu.matmul %43, %44, %cst {dimension_numbers = #tpu.dot_dimension_numbers<[1], [0], [0], [1], [0, 0, 1, 1], [], []>} : vector<32x4xbf16>, vector<4x128xbf16>, vector<32x128xf32> -> vector<32x128xf32>
    %46 = vector.extract_strided_slice %35 {offsets = [1, 0, 0], sizes = [1, 32, 4], strides = [1, 1, 1]} : vector<3x32x4xbf16> to vector<1x32x4xbf16>
    %47 = vector.shape_cast %46 : vector<1x32x4xbf16> to vector<32x4xbf16>
    %48 = arith.truncf %34 : vector<4x128xf32> to vector<4x128xbf16>
    %cst_10 = arith.constant dense<0.000000e+00> : vector<32x128xf32>
    %49 = tpu.matmul %47, %48, %cst_10 {dimension_numbers = #tpu.dot_dimension_numbers<[1], [0], [0], [1], [0, 0, 1, 1], [], []>} : vector<32x4xbf16>, vector<4x128xbf16>, vector<32x128xf32> -> vector<32x128xf32>
    %50 = arith.addf %45, %49 : vector<32x128xf32>
    %51 = vector.extract_strided_slice %35 {offsets = [2, 0, 0], sizes = [1, 32, 4], strides = [1, 1, 1]} : vector<3x32x4xbf16> to vector<1x32x4xbf16>
    %52 = vector.shape_cast %51 : vector<1x32x4xbf16> to vector<32x4xbf16>
    %53 = arith.truncf %41 : vector<4x128xf32> to vector<4x128xbf16>
    %cst_11 = arith.constant dense<0.000000e+00> : vector<32x128xf32>
    %54 = tpu.matmul %52, %53, %cst_11 {dimension_numbers = #tpu.dot_dimension_numbers<[1], [0], [0], [1], [0, 0, 1, 1], [], []>} : vector<32x4xbf16>, vector<4x128xbf16>, vector<32x128xf32> -> vector<32x128xf32>
    %55 = arith.addf %50, %54 : vector<32x128xf32>
    %cst_12 = arith.constant 0.000000e+00 : f32
    %56 = vector.broadcast %cst_12 : f32 to vector<32x128xf32>
    %c0_13 = arith.constant 0 : index
    %c0_14 = arith.constant 0 : index
    %c0_15 = arith.constant 0 : index
    %c0_16 = arith.constant 0 : index
    %57 = vector.load %arg4[%c0_13, %c0_14, %c0_15, %c0_16] : memref<6x3x32x32xbf16, #tpu.memory_space<vmem>>, vector<1x3x32x32xbf16>
    %58 = vector.shape_cast %57 : vector<1x3x32x32xbf16> to vector<3x32x32xbf16>
    %c1_i32_17 = arith.constant 1 : i32
    %59 = tpu.dynamic_rotate %55 by %c1_i32_17 dim 1 : vector<32x128xf32>, i32 -> vector<32x128xf32>
    %60 = vector.broadcast %20 : vector<1x128xf32> to vector<32x128xf32>
    %61 = arith.mulf %59, %60 : vector<32x128xf32>
    %c127_i32_18 = arith.constant 127 : i32
    %62 = tpu.dynamic_rotate %55 by %c127_i32_18 dim 1 : vector<32x128xf32>, i32 -> vector<32x128xf32>
    %63 = vector.broadcast %28 : vector<1x128xf32> to vector<32x128xf32>
    %64 = arith.mulf %62, %63 : vector<32x128xf32>
    %65 = vector.extract_strided_slice %58 {offsets = [0, 0, 0], sizes = [1, 32, 32], strides = [1, 1, 1]} : vector<3x32x32xbf16> to vector<1x32x32xbf16>
    %66 = vector.shape_cast %65 : vector<1x32x32xbf16> to vector<32x32xbf16>
    %67 = arith.truncf %61 : vector<32x128xf32> to vector<32x128xbf16>
    %cst_19 = arith.constant dense<0.000000e+00> : vector<32x128xf32>
    %68 = tpu.matmul %66, %67, %cst_19 {dimension_numbers = #tpu.dot_dimension_numbers<[1], [0], [0], [1], [0, 0, 1, 1], [], []>} : vector<32x32xbf16>, vector<32x128xbf16>, vector<32x128xf32> -> vector<32x128xf32>
    %69 = vector.extract_strided_slice %58 {offsets = [1, 0, 0], sizes = [1, 32, 32], strides = [1, 1, 1]} : vector<3x32x32xbf16> to vector<1x32x32xbf16>
    %70 = vector.shape_cast %69 : vector<1x32x32xbf16> to vector<32x32xbf16>
    %71 = arith.truncf %55 : vector<32x128xf32> to vector<32x128xbf16>
    %cst_20 = arith.constant dense<0.000000e+00> : vector<32x128xf32>
    %72 = tpu.matmul %70, %71, %cst_20 {dimension_numbers = #tpu.dot_dimension_numbers<[1], [0], [0], [1], [0, 0, 1, 1], [], []>} : vector<32x32xbf16>, vector<32x128xbf16>, vector<32x128xf32> -> vector<32x128xf32>
    %73 = arith.addf %68, %72 : vector<32x128xf32>
    %74 = vector.extract_strided_slice %58 {offsets = [2, 0, 0], sizes = [1, 32, 32], strides = [1, 1, 1]} : vector<3x32x32xbf16> to vector<1x32x32xbf16>
    %75 = vector.shape_cast %74 : vector<1x32x32xbf16> to vector<32x32xbf16>
    %76 = arith.truncf %64 : vector<32x128xf32> to vector<32x128xbf16>
    %cst_21 = arith.constant dense<0.000000e+00> : vector<32x128xf32>
    %77 = tpu.matmul %75, %76, %cst_21 {dimension_numbers = #tpu.dot_dimension_numbers<[1], [0], [0], [1], [0, 0, 1, 1], [], []>} : vector<32x32xbf16>, vector<32x128xbf16>, vector<32x128xf32> -> vector<32x128xf32>
    %78 = arith.addf %73, %77 : vector<32x128xf32>
    %79 = vector.extract_strided_slice %78 {offsets = [0, 0], sizes = [16, 128], strides = [1, 1]} : vector<32x128xf32> to vector<16x128xf32>
    %80 = math.tanh %79 : vector<16x128xf32>
    %81 = vector.extract_strided_slice %78 {offsets = [16, 0], sizes = [16, 128], strides = [1, 1]} : vector<32x128xf32> to vector<16x128xf32>
    %82 = arith.negf %81 : vector<16x128xf32>
    %83 = math.exp %82 : vector<16x128xf32>
    %cst_22 = arith.constant 1.000000e+00 : f32
    %84 = vector.broadcast %cst_22 : f32 to vector<16x128xf32>
    %85 = arith.addf %84, %83 : vector<16x128xf32>
    %86 = arith.divf %84, %85 : vector<16x128xf32>
    %87 = arith.mulf %80, %86 : vector<16x128xf32>
    %c0_23 = arith.constant 0 : index
    %c0_24 = arith.constant 0 : index
    %c0_25 = arith.constant 0 : index
    %88 = vector.load %arg5[%c0_23, %c0_24, %c0_25] : memref<6x64x16xbf16, #tpu.memory_space<vmem>>, vector<1x64x16xbf16>
    %89 = vector.shape_cast %88 : vector<1x64x16xbf16> to vector<64x16xbf16>
    %90 = arith.truncf %87 : vector<16x128xf32> to vector<16x128xbf16>
    %cst_26 = arith.constant dense<0.000000e+00> : vector<64x128xf32>
    %91 = tpu.matmul %89, %90, %cst_26 {dimension_numbers = #tpu.dot_dimension_numbers<[1], [0], [0], [1], [0, 0, 1, 1], [], []>} : vector<64x16xbf16>, vector<16x128xbf16>, vector<64x128xf32> -> vector<64x128xf32>
    %92 = vector.extract_strided_slice %91 {offsets = [0, 0], sizes = [32, 128], strides = [1, 1]} : vector<64x128xf32> to vector<32x128xf32>
    %93 = arith.addf %56, %92 : vector<32x128xf32>
    %94 = vector.extract_strided_slice %91 {offsets = [32, 0], sizes = [32, 128], strides = [1, 1]} : vector<64x128xf32> to vector<32x128xf32>
    %95 = arith.addf %94, %55 : vector<32x128xf32>
    %cst_27 = arith.constant 0.707106769 : f32
    %96 = vector.broadcast %cst_27 : f32 to vector<32x128xf32>
    %97 = arith.mulf %95, %96 : vector<32x128xf32>
    %c1 = arith.constant 1 : index
    %c0_28 = arith.constant 0 : index
    %c0_29 = arith.constant 0 : index
    %c0_30 = arith.constant 0 : index
    %98 = vector.load %arg4[%c1, %c0_28, %c0_29, %c0_30] : memref<6x3x32x32xbf16, #tpu.memory_space<vmem>>, vector<1x3x32x32xbf16>
    %99 = vector.shape_cast %98 : vector<1x3x32x32xbf16> to vector<3x32x32xbf16>
    %c2_i32_31 = arith.constant 2 : i32
    %100 = tpu.dynamic_rotate %97 by %c2_i32_31 dim 1 : vector<32x128xf32>, i32 -> vector<32x128xf32>
    %101 = vector.broadcast %24 : vector<1x128xf32> to vector<32x128xf32>
    %102 = arith.mulf %100, %101 : vector<32x128xf32>
    %c126_i32 = arith.constant 126 : i32
    %103 = tpu.dynamic_rotate %97 by %c126_i32 dim 1 : vector<32x128xf32>, i32 -> vector<32x128xf32>
    %104 = vector.broadcast %32 : vector<1x128xf32> to vector<32x128xf32>
    %105 = arith.mulf %103, %104 : vector<32x128xf32>
    %106 = vector.extract_strided_slice %99 {offsets = [0, 0, 0], sizes = [1, 32, 32], strides = [1, 1, 1]} : vector<3x32x32xbf16> to vector<1x32x32xbf16>
    %107 = vector.shape_cast %106 : vector<1x32x32xbf16> to vector<32x32xbf16>
    %108 = arith.truncf %102 : vector<32x128xf32> to vector<32x128xbf16>
    %cst_32 = arith.constant dense<0.000000e+00> : vector<32x128xf32>
    %109 = tpu.matmul %107, %108, %cst_32 {dimension_numbers = #tpu.dot_dimension_numbers<[1], [0], [0], [1], [0, 0, 1, 1], [], []>} : vector<32x32xbf16>, vector<32x128xbf16>, vector<32x128xf32> -> vector<32x128xf32>
    %110 = vector.extract_strided_slice %99 {offsets = [1, 0, 0], sizes = [1, 32, 32], strides = [1, 1, 1]} : vector<3x32x32xbf16> to vector<1x32x32xbf16>
    %111 = vector.shape_cast %110 : vector<1x32x32xbf16> to vector<32x32xbf16>
    %112 = arith.truncf %97 : vector<32x128xf32> to vector<32x128xbf16>
    %cst_33 = arith.constant dense<0.000000e+00> : vector<32x128xf32>
    %113 = tpu.matmul %111, %112, %cst_33 {dimension_numbers = #tpu.dot_dimension_numbers<[1], [0], [0], [1], [0, 0, 1, 1], [], []>} : vector<32x32xbf16>, vector<32x128xbf16>, vector<32x128xf32> -> vector<32x128xf32>
    %114 = arith.addf %109, %113 : vector<32x128xf32>
    %115 = vector.extract_strided_slice %99 {offsets = [2, 0, 0], sizes = [1, 32, 32], strides = [1, 1, 1]} : vector<3x32x32xbf16> to vector<1x32x32xbf16>
    %116 = vector.shape_cast %115 : vector<1x32x32xbf16> to vector<32x32xbf16>
    %117 = arith.truncf %105 : vector<32x128xf32> to vector<32x128xbf16>
    %cst_34 = arith.constant dense<0.000000e+00> : vector<32x128xf32>
    %118 = tpu.matmul %116, %117, %cst_34 {dimension_numbers = #tpu.dot_dimension_numbers<[1], [0], [0], [1], [0, 0, 1, 1], [], []>} : vector<32x32xbf16>, vector<32x128xbf16>, vector<32x128xf32> -> vector<32x128xf32>
    %119 = arith.addf %114, %118 : vector<32x128xf32>
    %120 = vector.extract_strided_slice %119 {offsets = [0, 0], sizes = [16, 128], strides = [1, 1]} : vector<32x128xf32> to vector<16x128xf32>
    %121 = math.tanh %120 : vector<16x128xf32>
    %122 = vector.extract_strided_slice %119 {offsets = [16, 0], sizes = [16, 128], strides = [1, 1]} : vector<32x128xf32> to vector<16x128xf32>
    %123 = arith.negf %122 : vector<16x128xf32>
    %124 = math.exp %123 : vector<16x128xf32>
    %cst_35 = arith.constant 1.000000e+00 : f32
    %125 = vector.broadcast %cst_35 : f32 to vector<16x128xf32>
    %126 = arith.addf %125, %124 : vector<16x128xf32>
    %127 = arith.divf %125, %126 : vector<16x128xf32>
    %128 = arith.mulf %121, %127 : vector<16x128xf32>
    %c1_36 = arith.constant 1 : index
    %c0_37 = arith.constant 0 : index
    %c0_38 = arith.constant 0 : index
    %129 = vector.load %arg5[%c1_36, %c0_37, %c0_38] : memref<6x64x16xbf16, #tpu.memory_space<vmem>>, vector<1x64x16xbf16>
    %130 = vector.shape_cast %129 : vector<1x64x16xbf16> to vector<64x16xbf16>
    %131 = arith.truncf %128 : vector<16x128xf32> to vector<16x128xbf16>
    %cst_39 = arith.constant dense<0.000000e+00> : vector<64x128xf32>
    %132 = tpu.matmul %130, %131, %cst_39 {dimension_numbers = #tpu.dot_dimension_numbers<[1], [0], [0], [1], [0, 0, 1, 1], [], []>} : vector<64x16xbf16>, vector<16x128xbf16>, vector<64x128xf32> -> vector<64x128xf32>
    %133 = vector.extract_strided_slice %132 {offsets = [0, 0], sizes = [32, 128], strides = [1, 1]} : vector<64x128xf32> to vector<32x128xf32>
    %134 = arith.addf %93, %133 : vector<32x128xf32>
    %135 = vector.extract_strided_slice %132 {offsets = [32, 0], sizes = [32, 128], strides = [1, 1]} : vector<64x128xf32> to vector<32x128xf32>
    %136 = arith.addf %135, %97 : vector<32x128xf32>
    %cst_40 = arith.constant 0.707106769 : f32
    %137 = vector.broadcast %cst_40 : f32 to vector<32x128xf32>
    %138 = arith.mulf %136, %137 : vector<32x128xf32>
    %c2 = arith.constant 2 : index
    %c0_41 = arith.constant 0 : index
    %c0_42 = arith.constant 0 : index
    %c0_43 = arith.constant 0 : index
    %139 = vector.load %arg4[%c2, %c0_41, %c0_42, %c0_43] : memref<6x3x32x32xbf16, #tpu.memory_space<vmem>>, vector<1x3x32x32xbf16>
    %140 = vector.shape_cast %139 : vector<1x3x32x32xbf16> to vector<3x32x32xbf16>
    %c1_i32_44 = arith.constant 1 : i32
    %141 = tpu.dynamic_rotate %138 by %c1_i32_44 dim 1 : vector<32x128xf32>, i32 -> vector<32x128xf32>
    %142 = vector.broadcast %20 : vector<1x128xf32> to vector<32x128xf32>
    %143 = arith.mulf %141, %142 : vector<32x128xf32>
    %c127_i32_45 = arith.constant 127 : i32
    %144 = tpu.dynamic_rotate %138 by %c127_i32_45 dim 1 : vector<32x128xf32>, i32 -> vector<32x128xf32>
    %145 = vector.broadcast %28 : vector<1x128xf32> to vector<32x128xf32>
    %146 = arith.mulf %144, %145 : vector<32x128xf32>
    %147 = vector.extract_strided_slice %140 {offsets = [0, 0, 0], sizes = [1, 32, 32], strides = [1, 1, 1]} : vector<3x32x32xbf16> to vector<1x32x32xbf16>
    %148 = vector.shape_cast %147 : vector<1x32x32xbf16> to vector<32x32xbf16>
    %149 = arith.truncf %143 : vector<32x128xf32> to vector<32x128xbf16>
    %cst_46 = arith.constant dense<0.000000e+00> : vector<32x128xf32>
    %150 = tpu.matmul %148, %149, %cst_46 {dimension_numbers = #tpu.dot_dimension_numbers<[1], [0], [0], [1], [0, 0, 1, 1], [], []>} : vector<32x32xbf16>, vector<32x128xbf16>, vector<32x128xf32> -> vector<32x128xf32>
    %151 = vector.extract_strided_slice %140 {offsets = [1, 0, 0], sizes = [1, 32, 32], strides = [1, 1, 1]} : vector<3x32x32xbf16> to vector<1x32x32xbf16>
    %152 = vector.shape_cast %151 : vector<1x32x32xbf16> to vector<32x32xbf16>
    %153 = arith.truncf %138 : vector<32x128xf32> to vector<32x128xbf16>
    %cst_47 = arith.constant dense<0.000000e+00> : vector<32x128xf32>
    %154 = tpu.matmul %152, %153, %cst_47 {dimension_numbers = #tpu.dot_dimension_numbers<[1], [0], [0], [1], [0, 0, 1, 1], [], []>} : vector<32x32xbf16>, vector<32x128xbf16>, vector<32x128xf32> -> vector<32x128xf32>
    %155 = arith.addf %150, %154 : vector<32x128xf32>
    %156 = vector.extract_strided_slice %140 {offsets = [2, 0, 0], sizes = [1, 32, 32], strides = [1, 1, 1]} : vector<3x32x32xbf16> to vector<1x32x32xbf16>
    %157 = vector.shape_cast %156 : vector<1x32x32xbf16> to vector<32x32xbf16>
    %158 = arith.truncf %146 : vector<32x128xf32> to vector<32x128xbf16>
    %cst_48 = arith.constant dense<0.000000e+00> : vector<32x128xf32>
    %159 = tpu.matmul %157, %158, %cst_48 {dimension_numbers = #tpu.dot_dimension_numbers<[1], [0], [0], [1], [0, 0, 1, 1], [], []>} : vector<32x32xbf16>, vector<32x128xbf16>, vector<32x128xf32> -> vector<32x128xf32>
    %160 = arith.addf %155, %159 : vector<32x128xf32>
    %161 = vector.extract_strided_slice %160 {offsets = [0, 0], sizes = [16, 128], strides = [1, 1]} : vector<32x128xf32> to vector<16x128xf32>
    %162 = math.tanh %161 : vector<16x128xf32>
    %163 = vector.extract_strided_slice %160 {offsets = [16, 0], sizes = [16, 128], strides = [1, 1]} : vector<32x128xf32> to vector<16x128xf32>
    %164 = arith.negf %163 : vector<16x128xf32>
    %165 = math.exp %164 : vector<16x128xf32>
    %cst_49 = arith.constant 1.000000e+00 : f32
    %166 = vector.broadcast %cst_49 : f32 to vector<16x128xf32>
    %167 = arith.addf %166, %165 : vector<16x128xf32>
    %168 = arith.divf %166, %167 : vector<16x128xf32>
    %169 = arith.mulf %162, %168 : vector<16x128xf32>
    %c2_50 = arith.constant 2 : index
    %c0_51 = arith.constant 0 : index
    %c0_52 = arith.constant 0 : index
    %170 = vector.load %arg5[%c2_50, %c0_51, %c0_52] : memref<6x64x16xbf16, #tpu.memory_space<vmem>>, vector<1x64x16xbf16>
    %171 = vector.shape_cast %170 : vector<1x64x16xbf16> to vector<64x16xbf16>
    %172 = arith.truncf %169 : vector<16x128xf32> to vector<16x128xbf16>
    %cst_53 = arith.constant dense<0.000000e+00> : vector<64x128xf32>
    %173 = tpu.matmul %171, %172, %cst_53 {dimension_numbers = #tpu.dot_dimension_numbers<[1], [0], [0], [1], [0, 0, 1, 1], [], []>} : vector<64x16xbf16>, vector<16x128xbf16>, vector<64x128xf32> -> vector<64x128xf32>
    %174 = vector.extract_strided_slice %173 {offsets = [0, 0], sizes = [32, 128], strides = [1, 1]} : vector<64x128xf32> to vector<32x128xf32>
    %175 = arith.addf %134, %174 : vector<32x128xf32>
    %176 = vector.extract_strided_slice %173 {offsets = [32, 0], sizes = [32, 128], strides = [1, 1]} : vector<64x128xf32> to vector<32x128xf32>
    %177 = arith.addf %176, %138 : vector<32x128xf32>
    %cst_54 = arith.constant 0.707106769 : f32
    %178 = vector.broadcast %cst_54 : f32 to vector<32x128xf32>
    %179 = arith.mulf %177, %178 : vector<32x128xf32>
    %c3 = arith.constant 3 : index
    %c0_55 = arith.constant 0 : index
    %c0_56 = arith.constant 0 : index
    %c0_57 = arith.constant 0 : index
    %180 = vector.load %arg4[%c3, %c0_55, %c0_56, %c0_57] : memref<6x3x32x32xbf16, #tpu.memory_space<vmem>>, vector<1x3x32x32xbf16>
    %181 = vector.shape_cast %180 : vector<1x3x32x32xbf16> to vector<3x32x32xbf16>
    %c2_i32_58 = arith.constant 2 : i32
    %182 = tpu.dynamic_rotate %179 by %c2_i32_58 dim 1 : vector<32x128xf32>, i32 -> vector<32x128xf32>
    %183 = vector.broadcast %24 : vector<1x128xf32> to vector<32x128xf32>
    %184 = arith.mulf %182, %183 : vector<32x128xf32>
    %c126_i32_59 = arith.constant 126 : i32
    %185 = tpu.dynamic_rotate %179 by %c126_i32_59 dim 1 : vector<32x128xf32>, i32 -> vector<32x128xf32>
    %186 = vector.broadcast %32 : vector<1x128xf32> to vector<32x128xf32>
    %187 = arith.mulf %185, %186 : vector<32x128xf32>
    %188 = vector.extract_strided_slice %181 {offsets = [0, 0, 0], sizes = [1, 32, 32], strides = [1, 1, 1]} : vector<3x32x32xbf16> to vector<1x32x32xbf16>
    %189 = vector.shape_cast %188 : vector<1x32x32xbf16> to vector<32x32xbf16>
    %190 = arith.truncf %184 : vector<32x128xf32> to vector<32x128xbf16>
    %cst_60 = arith.constant dense<0.000000e+00> : vector<32x128xf32>
    %191 = tpu.matmul %189, %190, %cst_60 {dimension_numbers = #tpu.dot_dimension_numbers<[1], [0], [0], [1], [0, 0, 1, 1], [], []>} : vector<32x32xbf16>, vector<32x128xbf16>, vector<32x128xf32> -> vector<32x128xf32>
    %192 = vector.extract_strided_slice %181 {offsets = [1, 0, 0], sizes = [1, 32, 32], strides = [1, 1, 1]} : vector<3x32x32xbf16> to vector<1x32x32xbf16>
    %193 = vector.shape_cast %192 : vector<1x32x32xbf16> to vector<32x32xbf16>
    %194 = arith.truncf %179 : vector<32x128xf32> to vector<32x128xbf16>
    %cst_61 = arith.constant dense<0.000000e+00> : vector<32x128xf32>
    %195 = tpu.matmul %193, %194, %cst_61 {dimension_numbers = #tpu.dot_dimension_numbers<[1], [0], [0], [1], [0, 0, 1, 1], [], []>} : vector<32x32xbf16>, vector<32x128xbf16>, vector<32x128xf32> -> vector<32x128xf32>
    %196 = arith.addf %191, %195 : vector<32x128xf32>
    %197 = vector.extract_strided_slice %181 {offsets = [2, 0, 0], sizes = [1, 32, 32], strides = [1, 1, 1]} : vector<3x32x32xbf16> to vector<1x32x32xbf16>
    %198 = vector.shape_cast %197 : vector<1x32x32xbf16> to vector<32x32xbf16>
    %199 = arith.truncf %187 : vector<32x128xf32> to vector<32x128xbf16>
    %cst_62 = arith.constant dense<0.000000e+00> : vector<32x128xf32>
    %200 = tpu.matmul %198, %199, %cst_62 {dimension_numbers = #tpu.dot_dimension_numbers<[1], [0], [0], [1], [0, 0, 1, 1], [], []>} : vector<32x32xbf16>, vector<32x128xbf16>, vector<32x128xf32> -> vector<32x128xf32>
    %201 = arith.addf %196, %200 : vector<32x128xf32>
    %202 = vector.extract_strided_slice %201 {offsets = [0, 0], sizes = [16, 128], strides = [1, 1]} : vector<32x128xf32> to vector<16x128xf32>
    %203 = math.tanh %202 : vector<16x128xf32>
    %204 = vector.extract_strided_slice %201 {offsets = [16, 0], sizes = [16, 128], strides = [1, 1]} : vector<32x128xf32> to vector<16x128xf32>
    %205 = arith.negf %204 : vector<16x128xf32>
    %206 = math.exp %205 : vector<16x128xf32>
    %cst_63 = arith.constant 1.000000e+00 : f32
    %207 = vector.broadcast %cst_63 : f32 to vector<16x128xf32>
    %208 = arith.addf %207, %206 : vector<16x128xf32>
    %209 = arith.divf %207, %208 : vector<16x128xf32>
    %210 = arith.mulf %203, %209 : vector<16x128xf32>
    %c3_64 = arith.constant 3 : index
    %c0_65 = arith.constant 0 : index
    %c0_66 = arith.constant 0 : index
    %211 = vector.load %arg5[%c3_64, %c0_65, %c0_66] : memref<6x64x16xbf16, #tpu.memory_space<vmem>>, vector<1x64x16xbf16>
    %212 = vector.shape_cast %211 : vector<1x64x16xbf16> to vector<64x16xbf16>
    %213 = arith.truncf %210 : vector<16x128xf32> to vector<16x128xbf16>
    %cst_67 = arith.constant dense<0.000000e+00> : vector<64x128xf32>
    %214 = tpu.matmul %212, %213, %cst_67 {dimension_numbers = #tpu.dot_dimension_numbers<[1], [0], [0], [1], [0, 0, 1, 1], [], []>} : vector<64x16xbf16>, vector<16x128xbf16>, vector<64x128xf32> -> vector<64x128xf32>
    %215 = vector.extract_strided_slice %214 {offsets = [0, 0], sizes = [32, 128], strides = [1, 1]} : vector<64x128xf32> to vector<32x128xf32>
    %216 = arith.addf %175, %215 : vector<32x128xf32>
    %217 = vector.extract_strided_slice %214 {offsets = [32, 0], sizes = [32, 128], strides = [1, 1]} : vector<64x128xf32> to vector<32x128xf32>
    %218 = arith.addf %217, %179 : vector<32x128xf32>
    %cst_68 = arith.constant 0.707106769 : f32
    %219 = vector.broadcast %cst_68 : f32 to vector<32x128xf32>
    %220 = arith.mulf %218, %219 : vector<32x128xf32>
    %c4 = arith.constant 4 : index
    %c0_69 = arith.constant 0 : index
    %c0_70 = arith.constant 0 : index
    %c0_71 = arith.constant 0 : index
    %221 = vector.load %arg4[%c4, %c0_69, %c0_70, %c0_71] : memref<6x3x32x32xbf16, #tpu.memory_space<vmem>>, vector<1x3x32x32xbf16>
    %222 = vector.shape_cast %221 : vector<1x3x32x32xbf16> to vector<3x32x32xbf16>
    %c1_i32_72 = arith.constant 1 : i32
    %223 = tpu.dynamic_rotate %220 by %c1_i32_72 dim 1 : vector<32x128xf32>, i32 -> vector<32x128xf32>
    %224 = vector.broadcast %20 : vector<1x128xf32> to vector<32x128xf32>
    %225 = arith.mulf %223, %224 : vector<32x128xf32>
    %c127_i32_73 = arith.constant 127 : i32
    %226 = tpu.dynamic_rotate %220 by %c127_i32_73 dim 1 : vector<32x128xf32>, i32 -> vector<32x128xf32>
    %227 = vector.broadcast %28 : vector<1x128xf32> to vector<32x128xf32>
    %228 = arith.mulf %226, %227 : vector<32x128xf32>
    %229 = vector.extract_strided_slice %222 {offsets = [0, 0, 0], sizes = [1, 32, 32], strides = [1, 1, 1]} : vector<3x32x32xbf16> to vector<1x32x32xbf16>
    %230 = vector.shape_cast %229 : vector<1x32x32xbf16> to vector<32x32xbf16>
    %231 = arith.truncf %225 : vector<32x128xf32> to vector<32x128xbf16>
    %cst_74 = arith.constant dense<0.000000e+00> : vector<32x128xf32>
    %232 = tpu.matmul %230, %231, %cst_74 {dimension_numbers = #tpu.dot_dimension_numbers<[1], [0], [0], [1], [0, 0, 1, 1], [], []>} : vector<32x32xbf16>, vector<32x128xbf16>, vector<32x128xf32> -> vector<32x128xf32>
    %233 = vector.extract_strided_slice %222 {offsets = [1, 0, 0], sizes = [1, 32, 32], strides = [1, 1, 1]} : vector<3x32x32xbf16> to vector<1x32x32xbf16>
    %234 = vector.shape_cast %233 : vector<1x32x32xbf16> to vector<32x32xbf16>
    %235 = arith.truncf %220 : vector<32x128xf32> to vector<32x128xbf16>
    %cst_75 = arith.constant dense<0.000000e+00> : vector<32x128xf32>
    %236 = tpu.matmul %234, %235, %cst_75 {dimension_numbers = #tpu.dot_dimension_numbers<[1], [0], [0], [1], [0, 0, 1, 1], [], []>} : vector<32x32xbf16>, vector<32x128xbf16>, vector<32x128xf32> -> vector<32x128xf32>
    %237 = arith.addf %232, %236 : vector<32x128xf32>
    %238 = vector.extract_strided_slice %222 {offsets = [2, 0, 0], sizes = [1, 32, 32], strides = [1, 1, 1]} : vector<3x32x32xbf16> to vector<1x32x32xbf16>
    %239 = vector.shape_cast %238 : vector<1x32x32xbf16> to vector<32x32xbf16>
    %240 = arith.truncf %228 : vector<32x128xf32> to vector<32x128xbf16>
    %cst_76 = arith.constant dense<0.000000e+00> : vector<32x128xf32>
    %241 = tpu.matmul %239, %240, %cst_76 {dimension_numbers = #tpu.dot_dimension_numbers<[1], [0], [0], [1], [0, 0, 1, 1], [], []>} : vector<32x32xbf16>, vector<32x128xbf16>, vector<32x128xf32> -> vector<32x128xf32>
    %242 = arith.addf %237, %241 : vector<32x128xf32>
    %243 = vector.extract_strided_slice %242 {offsets = [0, 0], sizes = [16, 128], strides = [1, 1]} : vector<32x128xf32> to vector<16x128xf32>
    %244 = math.tanh %243 : vector<16x128xf32>
    %245 = vector.extract_strided_slice %242 {offsets = [16, 0], sizes = [16, 128], strides = [1, 1]} : vector<32x128xf32> to vector<16x128xf32>
    %246 = arith.negf %245 : vector<16x128xf32>
    %247 = math.exp %246 : vector<16x128xf32>
    %cst_77 = arith.constant 1.000000e+00 : f32
    %248 = vector.broadcast %cst_77 : f32 to vector<16x128xf32>
    %249 = arith.addf %248, %247 : vector<16x128xf32>
    %250 = arith.divf %248, %249 : vector<16x128xf32>
    %251 = arith.mulf %244, %250 : vector<16x128xf32>
    %c4_78 = arith.constant 4 : index
    %c0_79 = arith.constant 0 : index
    %c0_80 = arith.constant 0 : index
    %252 = vector.load %arg5[%c4_78, %c0_79, %c0_80] : memref<6x64x16xbf16, #tpu.memory_space<vmem>>, vector<1x64x16xbf16>
    %253 = vector.shape_cast %252 : vector<1x64x16xbf16> to vector<64x16xbf16>
    %254 = arith.truncf %251 : vector<16x128xf32> to vector<16x128xbf16>
    %cst_81 = arith.constant dense<0.000000e+00> : vector<64x128xf32>
    %255 = tpu.matmul %253, %254, %cst_81 {dimension_numbers = #tpu.dot_dimension_numbers<[1], [0], [0], [1], [0, 0, 1, 1], [], []>} : vector<64x16xbf16>, vector<16x128xbf16>, vector<64x128xf32> -> vector<64x128xf32>
    %256 = vector.extract_strided_slice %255 {offsets = [0, 0], sizes = [32, 128], strides = [1, 1]} : vector<64x128xf32> to vector<32x128xf32>
    %257 = arith.addf %216, %256 : vector<32x128xf32>
    %258 = vector.extract_strided_slice %255 {offsets = [32, 0], sizes = [32, 128], strides = [1, 1]} : vector<64x128xf32> to vector<32x128xf32>
    %259 = arith.addf %258, %220 : vector<32x128xf32>
    %cst_82 = arith.constant 0.707106769 : f32
    %260 = vector.broadcast %cst_82 : f32 to vector<32x128xf32>
    %261 = arith.mulf %259, %260 : vector<32x128xf32>
    %c5 = arith.constant 5 : index
    %c0_83 = arith.constant 0 : index
    %c0_84 = arith.constant 0 : index
    %c0_85 = arith.constant 0 : index
    %262 = vector.load %arg4[%c5, %c0_83, %c0_84, %c0_85] : memref<6x3x32x32xbf16, #tpu.memory_space<vmem>>, vector<1x3x32x32xbf16>
    %263 = vector.shape_cast %262 : vector<1x3x32x32xbf16> to vector<3x32x32xbf16>
    %c2_i32_86 = arith.constant 2 : i32
    %264 = tpu.dynamic_rotate %261 by %c2_i32_86 dim 1 : vector<32x128xf32>, i32 -> vector<32x128xf32>
    %265 = vector.broadcast %24 : vector<1x128xf32> to vector<32x128xf32>
    %266 = arith.mulf %264, %265 : vector<32x128xf32>
    %c126_i32_87 = arith.constant 126 : i32
    %267 = tpu.dynamic_rotate %261 by %c126_i32_87 dim 1 : vector<32x128xf32>, i32 -> vector<32x128xf32>
    %268 = vector.broadcast %32 : vector<1x128xf32> to vector<32x128xf32>
    %269 = arith.mulf %267, %268 : vector<32x128xf32>
    %270 = vector.extract_strided_slice %263 {offsets = [0, 0, 0], sizes = [1, 32, 32], strides = [1, 1, 1]} : vector<3x32x32xbf16> to vector<1x32x32xbf16>
    %271 = vector.shape_cast %270 : vector<1x32x32xbf16> to vector<32x32xbf16>
    %272 = arith.truncf %266 : vector<32x128xf32> to vector<32x128xbf16>
    %cst_88 = arith.constant dense<0.000000e+00> : vector<32x128xf32>
    %273 = tpu.matmul %271, %272, %cst_88 {dimension_numbers = #tpu.dot_dimension_numbers<[1], [0], [0], [1], [0, 0, 1, 1], [], []>} : vector<32x32xbf16>, vector<32x128xbf16>, vector<32x128xf32> -> vector<32x128xf32>
    %274 = vector.extract_strided_slice %263 {offsets = [1, 0, 0], sizes = [1, 32, 32], strides = [1, 1, 1]} : vector<3x32x32xbf16> to vector<1x32x32xbf16>
    %275 = vector.shape_cast %274 : vector<1x32x32xbf16> to vector<32x32xbf16>
    %276 = arith.truncf %261 : vector<32x128xf32> to vector<32x128xbf16>
    %cst_89 = arith.constant dense<0.000000e+00> : vector<32x128xf32>
    %277 = tpu.matmul %275, %276, %cst_89 {dimension_numbers = #tpu.dot_dimension_numbers<[1], [0], [0], [1], [0, 0, 1, 1], [], []>} : vector<32x32xbf16>, vector<32x128xbf16>, vector<32x128xf32> -> vector<32x128xf32>
    %278 = arith.addf %273, %277 : vector<32x128xf32>
    %279 = vector.extract_strided_slice %263 {offsets = [2, 0, 0], sizes = [1, 32, 32], strides = [1, 1, 1]} : vector<3x32x32xbf16> to vector<1x32x32xbf16>
    %280 = vector.shape_cast %279 : vector<1x32x32xbf16> to vector<32x32xbf16>
    %281 = arith.truncf %269 : vector<32x128xf32> to vector<32x128xbf16>
    %cst_90 = arith.constant dense<0.000000e+00> : vector<32x128xf32>
    %282 = tpu.matmul %280, %281, %cst_90 {dimension_numbers = #tpu.dot_dimension_numbers<[1], [0], [0], [1], [0, 0, 1, 1], [], []>} : vector<32x32xbf16>, vector<32x128xbf16>, vector<32x128xf32> -> vector<32x128xf32>
    %283 = arith.addf %278, %282 : vector<32x128xf32>
    %284 = vector.extract_strided_slice %283 {offsets = [0, 0], sizes = [16, 128], strides = [1, 1]} : vector<32x128xf32> to vector<16x128xf32>
    %285 = math.tanh %284 : vector<16x128xf32>
    %286 = vector.extract_strided_slice %283 {offsets = [16, 0], sizes = [16, 128], strides = [1, 1]} : vector<32x128xf32> to vector<16x128xf32>
    %287 = arith.negf %286 : vector<16x128xf32>
    %288 = math.exp %287 : vector<16x128xf32>
    %cst_91 = arith.constant 1.000000e+00 : f32
    %289 = vector.broadcast %cst_91 : f32 to vector<16x128xf32>
    %290 = arith.addf %289, %288 : vector<16x128xf32>
    %291 = arith.divf %289, %290 : vector<16x128xf32>
    %292 = arith.mulf %285, %291 : vector<16x128xf32>
    %c5_92 = arith.constant 5 : index
    %c0_93 = arith.constant 0 : index
    %c0_94 = arith.constant 0 : index
    %293 = vector.load %arg5[%c5_92, %c0_93, %c0_94] : memref<6x64x16xbf16, #tpu.memory_space<vmem>>, vector<1x64x16xbf16>
    %294 = vector.shape_cast %293 : vector<1x64x16xbf16> to vector<64x16xbf16>
    %295 = arith.truncf %292 : vector<16x128xf32> to vector<16x128xbf16>
    %cst_95 = arith.constant dense<0.000000e+00> : vector<64x128xf32>
    %296 = tpu.matmul %294, %295, %cst_95 {dimension_numbers = #tpu.dot_dimension_numbers<[1], [0], [0], [1], [0, 0, 1, 1], [], []>} : vector<64x16xbf16>, vector<16x128xbf16>, vector<64x128xf32> -> vector<64x128xf32>
    %297 = vector.extract_strided_slice %296 {offsets = [0, 0], sizes = [32, 128], strides = [1, 1]} : vector<64x128xf32> to vector<32x128xf32>
    %298 = arith.addf %257, %297 : vector<32x128xf32>
    %cst_96 = arith.constant 0.000000e+00 : f32
    %299 = vector.broadcast %cst_96 : f32 to vector<32x128xf32>
    %300 = arith.maximumf %298, %299 : vector<32x128xf32>
    %c0_97 = arith.constant 0 : index
    %c0_98 = arith.constant 0 : index
    %c0_99 = arith.constant 0 : index
    %301 = vector.load %arg6[%c0_97, %c0_98, %c0_99] : memref<3x64x32xbf16, #tpu.memory_space<vmem>>, vector<3x64x32xbf16>
    %c1_i32_100 = arith.constant 1 : i32
    %302 = tpu.dynamic_rotate %300 by %c1_i32_100 dim 1 : vector<32x128xf32>, i32 -> vector<32x128xf32>
    %303 = vector.broadcast %20 : vector<1x128xf32> to vector<32x128xf32>
    %304 = arith.mulf %302, %303 : vector<32x128xf32>
    %c127_i32_101 = arith.constant 127 : i32
    %305 = tpu.dynamic_rotate %300 by %c127_i32_101 dim 1 : vector<32x128xf32>, i32 -> vector<32x128xf32>
    %306 = vector.broadcast %28 : vector<1x128xf32> to vector<32x128xf32>
    %307 = arith.mulf %305, %306 : vector<32x128xf32>
    %308 = vector.extract_strided_slice %301 {offsets = [0, 0, 0], sizes = [1, 64, 32], strides = [1, 1, 1]} : vector<3x64x32xbf16> to vector<1x64x32xbf16>
    %309 = vector.shape_cast %308 : vector<1x64x32xbf16> to vector<64x32xbf16>
    %310 = arith.truncf %304 : vector<32x128xf32> to vector<32x128xbf16>
    %cst_102 = arith.constant dense<0.000000e+00> : vector<64x128xf32>
    %311 = tpu.matmul %309, %310, %cst_102 {dimension_numbers = #tpu.dot_dimension_numbers<[1], [0], [0], [1], [0, 0, 1, 1], [], []>} : vector<64x32xbf16>, vector<32x128xbf16>, vector<64x128xf32> -> vector<64x128xf32>
    %312 = vector.extract_strided_slice %301 {offsets = [1, 0, 0], sizes = [1, 64, 32], strides = [1, 1, 1]} : vector<3x64x32xbf16> to vector<1x64x32xbf16>
    %313 = vector.shape_cast %312 : vector<1x64x32xbf16> to vector<64x32xbf16>
    %314 = arith.truncf %300 : vector<32x128xf32> to vector<32x128xbf16>
    %cst_103 = arith.constant dense<0.000000e+00> : vector<64x128xf32>
    %315 = tpu.matmul %313, %314, %cst_103 {dimension_numbers = #tpu.dot_dimension_numbers<[1], [0], [0], [1], [0, 0, 1, 1], [], []>} : vector<64x32xbf16>, vector<32x128xbf16>, vector<64x128xf32> -> vector<64x128xf32>
    %316 = arith.addf %311, %315 : vector<64x128xf32>
    %317 = vector.extract_strided_slice %301 {offsets = [2, 0, 0], sizes = [1, 64, 32], strides = [1, 1, 1]} : vector<3x64x32xbf16> to vector<1x64x32xbf16>
    %318 = vector.shape_cast %317 : vector<1x64x32xbf16> to vector<64x32xbf16>
    %319 = arith.truncf %307 : vector<32x128xf32> to vector<32x128xbf16>
    %cst_104 = arith.constant dense<0.000000e+00> : vector<64x128xf32>
    %320 = tpu.matmul %318, %319, %cst_104 {dimension_numbers = #tpu.dot_dimension_numbers<[1], [0], [0], [1], [0, 0, 1, 1], [], []>} : vector<64x32xbf16>, vector<32x128xbf16>, vector<64x128xf32> -> vector<64x128xf32>
    %321 = arith.addf %316, %320 : vector<64x128xf32>
    %cst_105 = arith.constant 0.000000e+00 : f32
    %322 = vector.broadcast %cst_105 : f32 to vector<64x128xf32>
    %323 = arith.maximumf %321, %322 : vector<64x128xf32>
    %c0_106 = arith.constant 0 : index
    %c0_107 = arith.constant 0 : index
    %c0_108 = arith.constant 0 : index
    %324 = vector.load %arg7[%c0_106, %c0_107, %c0_108] : memref<3x32x64xbf16, #tpu.memory_space<vmem>>, vector<3x32x64xbf16>
    %c1_i32_109 = arith.constant 1 : i32
    %325 = tpu.dynamic_rotate %323 by %c1_i32_109 dim 1 : vector<64x128xf32>, i32 -> vector<64x128xf32>
    %326 = vector.broadcast %20 : vector<1x128xf32> to vector<64x128xf32>
    %327 = arith.mulf %325, %326 : vector<64x128xf32>
    %c127_i32_110 = arith.constant 127 : i32
    %328 = tpu.dynamic_rotate %323 by %c127_i32_110 dim 1 : vector<64x128xf32>, i32 -> vector<64x128xf32>
    %329 = vector.broadcast %28 : vector<1x128xf32> to vector<64x128xf32>
    %330 = arith.mulf %328, %329 : vector<64x128xf32>
    %331 = vector.extract_strided_slice %324 {offsets = [0, 0, 0], sizes = [1, 32, 64], strides = [1, 1, 1]} : vector<3x32x64xbf16> to vector<1x32x64xbf16>
    %332 = vector.shape_cast %331 : vector<1x32x64xbf16> to vector<32x64xbf16>
    %333 = arith.truncf %327 : vector<64x128xf32> to vector<64x128xbf16>
    %cst_111 = arith.constant dense<0.000000e+00> : vector<32x128xf32>
    %334 = tpu.matmul %332, %333, %cst_111 {dimension_numbers = #tpu.dot_dimension_numbers<[1], [0], [0], [1], [0, 0, 1, 1], [], []>} : vector<32x64xbf16>, vector<64x128xbf16>, vector<32x128xf32> -> vector<32x128xf32>
    %335 = vector.extract_strided_slice %324 {offsets = [1, 0, 0], sizes = [1, 32, 64], strides = [1, 1, 1]} : vector<3x32x64xbf16> to vector<1x32x64xbf16>
    %336 = vector.shape_cast %335 : vector<1x32x64xbf16> to vector<32x64xbf16>
    %337 = arith.truncf %323 : vector<64x128xf32> to vector<64x128xbf16>
    %cst_112 = arith.constant dense<0.000000e+00> : vector<32x128xf32>
    %338 = tpu.matmul %336, %337, %cst_112 {dimension_numbers = #tpu.dot_dimension_numbers<[1], [0], [0], [1], [0, 0, 1, 1], [], []>} : vector<32x64xbf16>, vector<64x128xbf16>, vector<32x128xf32> -> vector<32x128xf32>
    %339 = arith.addf %334, %338 : vector<32x128xf32>
    %340 = vector.extract_strided_slice %324 {offsets = [2, 0, 0], sizes = [1, 32, 64], strides = [1, 1, 1]} : vector<3x32x64xbf16> to vector<1x32x64xbf16>
    %341 = vector.shape_cast %340 : vector<1x32x64xbf16> to vector<32x64xbf16>
    %342 = arith.truncf %330 : vector<64x128xf32> to vector<64x128xbf16>
    %cst_113 = arith.constant dense<0.000000e+00> : vector<32x128xf32>
    %343 = tpu.matmul %341, %342, %cst_113 {dimension_numbers = #tpu.dot_dimension_numbers<[1], [0], [0], [1], [0, 0, 1, 1], [], []>} : vector<32x64xbf16>, vector<64x128xbf16>, vector<32x128xf32> -> vector<32x128xf32>
    %344 = arith.addf %339, %343 : vector<32x128xf32>
    %c0_114 = arith.constant 0 : index
    %c0_115 = arith.constant 0 : index
    %345 = vector.load %arg8[%c0_114, %c0_115] : memref<1x32xbf16, #tpu.memory_space<vmem>>, vector<1x32xbf16>
    %346 = arith.truncf %344 : vector<32x128xf32> to vector<32x128xbf16>
    %cst_116 = arith.constant dense<0.000000e+00> : vector<1x128xf32>
    %347 = tpu.matmul %345, %346, %cst_116 {dimension_numbers = #tpu.dot_dimension_numbers<[1], [0], [0], [1], [0, 0, 1, 1], [], []>} : vector<1x32xbf16>, vector<32x128xbf16>, vector<1x128xf32> -> vector<1x128xf32>
    %c0_117 = arith.constant 0 : index
    %c0_118 = arith.constant 0 : index
    %348 = vector.load %arg9[%c0_117, %c0_118] : memref<1x1xf32, #tpu.memory_space<vmem>>, vector<1x1xf32>
    %349 = vector.broadcast %348 : vector<1x1xf32> to vector<1x128xf32>
    %350 = arith.addf %347, %349 : vector<1x128xf32>
    %c0_119 = arith.constant 0 : index
    %c0_120 = arith.constant 0 : index
    %c0_121 = arith.constant 0 : index
    %351 = vector.load %arg10[%c0_119, %c0_120, %c0_121] : memref<1x1x128xf32, #tpu.memory_space<vmem>>, vector<1x1x128xf32>
    %352 = vector.shape_cast %351 : vector<1x1x128xf32> to vector<1x128xf32>
    %353 = vector.shape_cast %350 : vector<1x128xf32> to vector<1x1x128xf32>
    tpu.vector_store %arg10[%c0_119, %c0_120, %c0_121], %353 {strides = array<i32>} : memref<1x1x128xf32, #tpu.memory_space<vmem>>, vector<1x1x128xf32>,
    return
  }
  func.func @transform_0(%arg0: i32, %arg1: i32) -> (i32, i32, i32) {
    %c0_i32 = arith.constant 0 : i32
    %c0_i32_0 = arith.constant 0 : i32
    return %arg0, %c0_i32, %arg1 : i32, i32, i32
  }
  func.func @transform_1(%arg0: i32, %arg1: i32) -> (i32, i32, i32) {
    %c0_i32 = arith.constant 0 : i32
    %c0_i32_0 = arith.constant 0 : i32
    %c0_i32_1 = arith.constant 0 : i32
    %c0_i32_2 = arith.constant 0 : i32
    return %c0_i32, %c0_i32_0, %c0_i32_1 : i32, i32, i32
  }
  func.func @transform_2(%arg0: i32, %arg1: i32) -> (i32, i32, i32, i32) {
    %c0_i32 = arith.constant 0 : i32
    %c0_i32_0 = arith.constant 0 : i32
    %c0_i32_1 = arith.constant 0 : i32
    %c0_i32_2 = arith.constant 0 : i32
    %c0_i32_3 = arith.constant 0 : i32
    return %c0_i32, %c0_i32_0, %c0_i32_1, %c0_i32_2 : i32, i32, i32, i32
  }
  func.func @transform_3(%arg0: i32, %arg1: i32) -> (i32, i32, i32) {
    %c0_i32 = arith.constant 0 : i32
    %c0_i32_0 = arith.constant 0 : i32
    %c0_i32_1 = arith.constant 0 : i32
    %c0_i32_2 = arith.constant 0 : i32
    return %c0_i32, %c0_i32_0, %c0_i32_1 : i32, i32, i32
  }
  func.func @transform_4(%arg0: i32, %arg1: i32) -> (i32, i32, i32) {
    %c0_i32 = arith.constant 0 : i32
    %c0_i32_0 = arith.constant 0 : i32
    %c0_i32_1 = arith.constant 0 : i32
    %c0_i32_2 = arith.constant 0 : i32
    return %c0_i32, %c0_i32_0, %c0_i32_1 : i32, i32, i32
  }
  func.func @transform_5(%arg0: i32, %arg1: i32) -> (i32, i32, i32) {
    %c0_i32 = arith.constant 0 : i32
    %c0_i32_0 = arith.constant 0 : i32
    %c0_i32_1 = arith.constant 0 : i32
    %c0_i32_2 = arith.constant 0 : i32
    return %c0_i32, %c0_i32_0, %c0_i32_1 : i32, i32, i32
  }
  func.func @transform_6(%arg0: i32, %arg1: i32) -> (i32, i32) {
    %c0_i32 = arith.constant 0 : i32
    %c0_i32_0 = arith.constant 0 : i32
    %c0_i32_1 = arith.constant 0 : i32
    return %c0_i32, %c0_i32_0 : i32, i32
  }
  func.func @transform_7(%arg0: i32, %arg1: i32) -> (i32, i32) {
    %c0_i32 = arith.constant 0 : i32
    %c0_i32_0 = arith.constant 0 : i32
    %c0_i32_1 = arith.constant 0 : i32
    return %c0_i32, %c0_i32_0 : i32, i32
  }
  func.func @transform_8(%arg0: i32, %arg1: i32) -> (i32, i32, i32) {
    %c0_i32 = arith.constant 0 : i32
    %c0_i32_0 = arith.constant 0 : i32
    return %arg0, %c0_i32, %arg1 : i32, i32, i32
  }
}

</mosaic_0001>

<bundles_post_ra>
// kernel: tpu_custom_call.1
= control target key start
LH: loop header
LB: loop body
LE: loop exit
PB: predicated region body
PF: predicated region fallthrough
CT: control target
= control target key end

     0   :  { %s4378_s0 = inlined_call_operand.vmem [shape: f32[2,4,128], index: 0, kind: input, shape index: {}]   ;;  %s4379_s1 = inlined_call_operand.vmem [shape: bf16[3,32,4], index: 1, kind: input, shape index: {}]   ;;  %s4380_s2 = inlined_call_operand.vmem [shape: bf16[6,3,32,32], index: 2, kind: input, shape index: {}]   ;;  %s4381_s3 = inlined_call_operand.vmem [shape: bf16[6,64,16], index: 3, kind: input, shape index: {}]   ;;  %s4382_s4 = inlined_call_operand.vmem [shape: bf16[3,64,32], index: 4, kind: input, shape index: {}]   ;;  %s4383_s5 = inlined_call_operand.vmem [shape: bf16[3,32,64], index: 5, kind: input, shape index: {}]   ;;  %s4384_s6 = inlined_call_operand.vmem [shape: bf16[1,32], index: 6, kind: input, shape index: {}]   ;;  %s4385_s7 = inlined_call_operand.<no memory space> [shape: f32[1,1], index: 7, kind: input, shape index: {}]   ;;  %s4386_s8 = inlined_call_operand.hbm [shape: f32[2,1,128], index: 8, kind: output, shape index: {}]  }
   0x1   :  { %v13_v0 = vstv %s4385_s7 }
   0x2   :  { %14 = vst [vmem:[#allocation2] sm:$0x1] %v13_v0 }
   0x3   :  { %15 = vsyncpa [#allocation4], 0 }
   0x4   :  { %17 = vsyncpa [#allocation4 + $0x1], 0  ;;  %s3592_s29 = smov 0   ;;  %s3594_s30 = smov 0  }
   0x5   :  { %s3596_s9 = smov 0   ;;  %s3598_s10 = smov 0  }
   0x6   :  { %s3600_s11 = smov 0   ;;  %s3602_s12 = smov 0  }
   0x7 LB: > { %s2693_s7 = sadd.s32 4294967295, %s3536_s12   ;;  %s2694_s13 = sadd.s32 4294967294, %s3536_s12   ;;  %s3536_s12 = sphi %s3602_s12, %s23_s12   ;;  %s3532_s11 = sphi %s3600_s11, %s4393_s11   ;;  %s3528_s10 = sphi %s3598_s10, %s4392_s10   ;;  %s3524_s9 = sphi %s3596_s9, %s4391_s9   ;;  %s3520_s30 = sphi %s3594_s30, %s4390_s30   ;;  %s3516_s29 = sphi %s3592_s29, %s4389_s29  }
   0x8   : > { %s35_s14 = sadd.s32 1, %s3532_s11  ;;  %s219_s15 = sadd.s32 1, %s3524_s9 }
   0x9   : > { %p37_p0 = scmp.ge.s32.totalorder %s35_s14, 2  ;;  %p229_p1 = scmp.ne.s32.totalorder %s3524_s9, %s3520_s30 }
   0xa   : > { %p230_p2 = scmp.eq.s32.totalorder %s2693_s7, 1  ;;  %p235_p3 = scmp.ne.s32.totalorder %s3520_s30, %s3516_s29 }
   0xb   : > { %s4395_s14 = smov (%p37_p0, %s35_s14), 0  ;;  %p236_p5 = scmp.eq.s32.totalorder %s2694_s13, 1 }
   0xc   : > { %p3632_p4 = por %p230_p2, %p229_p1  ;;  %s214_s17 = ssub.s32 %s3532_s11, %s4395_s14 }
   0xd   : > { %p2697_p6 = scmp.ge.s32.totalorder %s3536_s12, 1  ;;  %p217_p7 = scmp.eq.s32.totalorder %s214_s17, 0 }
   0xe   : > { %p3639_p8 = por %p236_p5, %p235_p3  ;;  %p285_p9 = scmp.lt.s32.totalorder %s3536_s12, 3 }
   0xf   : > { %s3645_s19 = scalar_select %p217_p7, %s3524_s9, %s219_s15  }
  0x10   : > { %p286_p10 = pnand %p2697_p6, %p285_p9 }
  0x11   : > { %p320_p11 = scmp.lt.s32.totalorder (!%p286_p10), %s3528_s10, 1  ;;  %s3538_s25 = smov (!%p286_p10), 127  }
  0x12   : > { %289 = sbr.rel (%p286_p10) target bundleno = 4094 (0xffe), region = 52  ;;  %s3539_s26 = smov (!%p286_p10), 1  }
  0x13   : > { %s3542_s27 = smov (!%p286_p10), 126   ;;  %s318_s28 = sand.u32 (!%p286_p10), 1, %s3520_s30  }
  0x14   : > { %s2622_s7 = scalar_lea.hbm (!%p286_p10), %s4386_s8, %s3528_s10  ;;  %s319_s13 = scalar_lea.vmem (!%p286_p10), [#allocation3], %s318_s28 }
  0x15   : > { %s2613_s15 = scalar_lea.sflag (!%p286_p10), [#allocation4], %s318_s28 }
  0x17   : > { %s321_s20 = scalar_select %p320_p11, %s3528_s10, 1  ;;  %vm392_vm0 = vcmask 1041408   ;;  %v3240_v4 = vld [vmem:[%s4379_s1 + $0x10] sm:$0xff]  ;;  %v328_v5 = vlaneseq  ;;  %vm385_vm1 = vcmask 31744   ;;  %v3241_v6 = vld [vmem:[%s4379_s1 + $0x18] sm:$0xff]  ;;  %v3540_v9 = vmov 0.0  }
  0x18   : > { %v3242_v15 = vld [vmem:[%s4379_s1 + $0x20] sm:$0xff]  ;;  %v3243_v22 = vld [vmem:[%s4379_s1 + $0x28] sm:$0xff]  ;;  %v3246_v47 = vld [vmem:[%s4380_s2 + $0x10] sm:$0xff]  ;;  %vm546_vm4 = vcmask 261120   ;;  %vm719_vm13 = vcmask 130048   ;;  %s3478_s10 = scalar_lea.hbm %s4386_s8, 2 }
  0x19   : > { %s2698_s21 = sshll.u32 %s321_s20, 2  ;;  %v329_v7 = vand.u32 127, %v328_v5  ;;  %v3238_v21 = vld [vmem:[%s4379_s1] sm:$0xff]  ;;  %v3239_v23 = vld [vmem:[%s4379_s1 + $0x8] sm:$0xff]  ;;  %v3247_v55 = vld [vmem:[%s4380_s2 + $0x18] sm:$0xff] }
  0x1a   : > { %s326_s24 = scalar_lea.vmem %s4378_s0, %s2698_s21  ;;  %v3248_v59 = vld [vmem:[%s4380_s2 + $0x20] sm:$0xff] }
  0x1b   : > { %v354_v1 = vld [vmem:[%s326_s24] sm:$0xf]  ;;  %v3663_v8 = vand.u32 7, %v329_v7  ;;  %v3245_v7 = vld [vmem:[%s4380_s2 + $0x8] sm:$0xff]  ;;  %s3541_s24 = smov 2  }
  0x1c   : > { %370 = vrot.lane.b32.xlu0 %v354_v1, %s3538_s25  ;;  %v374_v2 = vpack.c.bf16 %v354_v1, %v354_v1 }
  0x1d   : > { %vm348_vm2 = vcmp.lt.s32.totalorder %v3663_v8, 7  ;;  %vm342_vm3 = vcmp.ge.s32.totalorder %v3663_v8, 1  ;;  %vm345_vm14 = vcmp.ge.s32.totalorder %v3663_v8, 2  ;;  %vm351_vm15 = vcmp.lt.s32.totalorder %v3663_v8, 6  ;;  %v3254_v8 = vld [vmem:[%s4380_s2 + $0x30] sm:$0xff] }
  0x1e   : > { %v394_v3 = vsel %vm392_vm0, %v374_v2, 0  ;;  %v3667_v10 = vsel %vm348_vm2, 1.0, %v3540_v9  ;;  %v3676_v16 = vsel %vm342_vm3, 1.0, %v3540_v9 }
  0x1f   : > { %403 = vmatpush.bf16.msra.mxu0 %v394_v3  ;;  %3322 = vmatpush.bf16.msra.mxu3 %v394_v3 }
  0x22   : > { %2711 = vmatmul.msk.bf16.vlgmr.msra.gmra.mxu0 %vm385_vm1, %v3240_v4  ;;  %2712 = vmatmul.msk.bf16.vlgmr.msra.gmra.mxu3 %vm385_vm1, %v3241_v6  ;;  %v3244_v6 = vld [vmem:[%s4380_s2] sm:$0xff] }
  0x24   : > { %367 = vrot.lane.b32.xlu0 %v354_v1, %s3539_s26  ;;  %v3249_v1 = vld [vmem:[%s4380_s2 + $0x28] sm:$0xff] }
  0x8e   : > { %v371_v11 = vpop.permute.xlu0 %370 }
  0x8f   : > { %v372_v12 = vmul.f32 %v3667_v10, %v371_v11 }
  0x91   : > { %v453_v13 = vpack.c.bf16 %v372_v12, %v372_v12 }
  0x93   : > { %v471_v14 = vsel %vm392_vm0, %v453_v13, 0 }
  0x94   : > { %480 = vmatpush.bf16.msra.mxu2 %v471_v14 }
  0x96   : > { %v368_v17 = vpop.permute.xlu0 %367 }
  0x97   : > { %v369_v18 = vmul.f32 %v3676_v16, %v368_v17  ;;  %2731 = vmatmul.msk.bf16.vlgmr.msra.gmra.mxu2 %vm385_vm1, %v3242_v15 }
  0x99   : > { %v373_v19 = vpack.c.bf16 %v369_v18, %v369_v18 }
  0x9b   : > { %v432_v20 = vsel %vm392_vm0, %v373_v19, 0 }
  0x9c   : > { %441 = vmatpush.bf16.msra.mxu1 %v432_v20 }
  0x9f   : > { %2721 = vmatmul.msk.bf16.vlgmr.msra.gmra.mxu1 %vm385_vm1, %v3238_v21  ;;  %v405_v24 = vpop.f32.mrf.mxu0 }
  0xa5   : > { %v410_v34 = vpop.f32.mrf.mxu3 }
  0xa7   : > { %2732 = vmatmul.msk.bf16.gmra.mxu2 %vm385_vm1, %v3243_v22  ;;  %v407_v30 = vpop.f32.mrf.mxu0 }
  0xad   : > { %v412_v39 = vpop.f32.mrf.mxu3 }
  0xaf   : > { %2722 = vmatmul.msk.bf16.gmra.mxu1 %vm385_vm1, %v3239_v23 }
 0x11a   : > { %v482_v25 = vpop.f32.mrf.mxu2 }
 0x11c   : > { %v443_v26 = vpop.f32.mrf.mxu1 }
 0x11d   : > { %v444_v27 = vadd.f32 %v443_v26, %v405_v24 }
 0x11f   : > { %v3693_v28 = vadd.f32 %v482_v25, %v444_v27 }
 0x121   : > { %508 = vrot.lane.b32.xlu0 %v3693_v28, %s3539_s26 }
 0x122   : > { %v484_v29 = vpop.f32.mrf.mxu2 }
 0x124   : > { %v445_v31 = vpop.f32.mrf.mxu1 }
 0x125   : > { %v446_v32 = vadd.f32 %v445_v31, %v407_v30 }
 0x127   : > { %v3697_v33 = vadd.f32 %v484_v29, %v446_v32 }
 0x129   : > { %522 = vrot.lane.b32.xlu0 %v3697_v33, %s3538_s25  ;;  %v534_v45 = vpack.c.bf16 %v3697_v33, %v3693_v28 }
 0x12a   : > { %v487_v35 = vpop.f32.mrf.mxu2 }
 0x12c   : > { %v448_v36 = vpop.f32.mrf.mxu1 }
 0x12d   : > { %v449_v37 = vadd.f32 %v448_v36, %v410_v34 }
 0x12f   : > { %v3701_v38 = vadd.f32 %v487_v35, %v449_v37 }
 0x131   : > { %524 = vrot.lane.b32.xlu2 %v3701_v38, %s3538_s25  ;;  %512 = vrot.lane.b32.xlu1 %v3701_v38, %s3539_s26 }
 0x132   : > { %v489_v42 = vpop.f32.mrf.mxu2 }
 0x134   : > { %v450_v40 = vpop.f32.mrf.mxu1 }
 0x135   : > { %v451_v41 = vadd.f32 %v450_v40, %v412_v39 }
 0x137   : > { %v3707_v43 = vadd.f32 %v489_v42, %v451_v41 }
 0x139   : > { %526 = vrot.lane.b32.xlu2 %v3707_v43, %s3538_s25  ;;  %514 = vrot.lane.b32.xlu1 %v3707_v43, %s3539_s26  ;;  %v535_v44 = vpack.c.bf16 %v3707_v43, %v3701_v38 }
 0x13b   : > { %559 = vmatpush.bf16.msrb.mxu3 %v535_v44 }
 0x13f   : > { %560 = vmatpush.bf16.msrb.mxu3 %v534_v45 }
 0x141   : > { %520 = vrot.lane.b32.xlu2 %v3693_v28, %s3538_s25  ;;  %510 = vrot.lane.b32.xlu1 %v3697_v33, %s3539_s26 }
 0x142   : > { %2741 = vmatmul.msk.bf16.vlgmr.msrb.gmra.mxu3 %vm546_vm4, %v3246_v47 }
 0x152   : > { %2742 = vmatmul.msk.bf16.gmra.mxu3 %vm546_vm4, %v3247_v55 }
 0x18b   : > { %v525_v46 = vpop.permute.xlu2 %524 }
 0x18c   : > { %v530_v50 = vmul.f32 %v3667_v10, %v525_v46 }
 0x193   : > { %v527_v48 = vpop.permute.xlu2 %526  ;;  %v509_v49 = vpop.permute.xlu0 %508 }
 0x194   : > { %v531_v51 = vmul.f32 %v3667_v10, %v527_v48  ;;  %v516_v3 = vmul.f32 %v3676_v16, %v509_v49 }
 0x196   : > { %v608_v52 = vpack.c.bf16 %v531_v51, %v530_v50 }
 0x198   : > { %631 = vmatpush.bf16.msrb.mxu1 %v608_v52 }
 0x19b   : > { %v521_v53 = vpop.permute.xlu2 %520  ;;  %v523_v54 = vpop.permute.xlu0 %522 }
 0x19c   : > { %v528_v56 = vmul.f32 %v3667_v10, %v521_v53  ;;  %v529_v57 = vmul.f32 %v3667_v10, %v523_v54 }
 0x19e   : > { %v607_v58 = vpack.c.bf16 %v529_v57, %v528_v56 }
 0x1a0   : > { %632 = vmatpush.bf16.msrb.mxu1 %v607_v58 }
 0x1a3   : > { %v513_v60 = vpop.permute.xlu1 %512  ;;  %2761 = vmatmul.msk.bf16.vlgmr.msrb.gmra.mxu1 %vm546_vm4, %v3248_v59 }
 0x1a4   : > { %v518_v62 = vmul.f32 %v3676_v16, %v513_v60 }
 0x1ab   : > { %v515_v61 = vpop.permute.xlu1 %514 }
 0x1ac   : > { %v519_v63 = vmul.f32 %v3676_v16, %v515_v61 }
 0x1ae   : > { %v533_v0 = vpack.c.bf16 %v519_v63, %v518_v62 }
 0x1b0   : > { %594 = vmatpush.bf16.msrb.mxu0 %v533_v0 }
 0x1b3   : > { %v511_v2 = vpop.permute.xlu1 %510  ;;  %2762 = vmatmul.msk.bf16.gmra.mxu1 %vm546_vm4, %v3249_v1 }
 0x1b4   : > { %v517_v4 = vmul.f32 %v3676_v16, %v511_v2 }
 0x1b6   : > { %v532_v5 = vpack.c.bf16 %v517_v4, %v516_v3  ;;  %v3250_v3 = vld [vmem:[%s4381_s3] sm:$0xff]  ;;  %v3251_v4 = vld [vmem:[%s4381_s3 + $0x8] sm:$0xff] }
 0x1b8   : > { %595 = vmatpush.bf16.msrb.mxu0 %v532_v5  ;;  %v3252_v5 = vld [vmem:[%s4381_s3 + $0x10] sm:$0xff] }
 0x1bb   : > { %2751 = vmatmul.msk.bf16.vlgmr.msrb.gmra.mxu0 %vm546_vm4, %v3244_v6  ;;  %v3253_v6 = vld [vmem:[%s4381_s3 + $0x18] sm:$0xff] }
 0x1c5   : > { %v562_v11 = vpop.f32.mrf.mxu3 }
 0x1cb   : > { %2752 = vmatmul.msk.bf16.gmra.mxu0 %vm546_vm4, %v3245_v7 }
 0x1cd   : > { %v564_v14 = vpop.f32.mrf.mxu3 }
 0x1d5   : > { %v567_v18 = vpop.f32.mrf.mxu3 }
 0x1dd   : > { %v569_v24 = vpop.f32.mrf.mxu3 }
 0x220   : > { %v634_v12 = vpop.f32.mrf.mxu1 }
 0x228   : > { %v636_v15 = vpop.f32.mrf.mxu1 }
 0x230   : > { %v639_v19 = vpop.f32.mrf.mxu1 }
 0x238   : > { %v597_v13 = vpop.f32.mrf.mxu0  ;;  %v641_v27 = vpop.f32.mrf.mxu1 }
 0x239   : > { %v598_v39 = vadd.f32 %v597_v13, %v562_v11 }
 0x23b   : > { %v644_v44 = vadd.f32 %v634_v12, %v598_v39 }
 0x240   : > { %v599_v17 = vpop.f32.mrf.mxu0 }
 0x241   : > { %v600_v41 = vadd.f32 %v599_v17, %v564_v14 }
 0x243   : > { %v645_v46 = vadd.f32 %v636_v15, %v600_v41 }
 0x248   : > { %v602_v20 = vpop.f32.mrf.mxu0 }
 0x249   : > { %v603_v21 = vadd.f32 %v602_v20, %v567_v18 }
 0x24b   : > { %v646_v22 = vadd.f32 %v639_v19, %v603_v21 }
 0x24d   : > { %v2763_v23 = vmul.f32 -1.442695, %v646_v22 }
 0x24f   : > { %3386 = vpow2.f32 %v2763_v23 }
 0x250   : > { %v604_v25 = vpop.f32.mrf.mxu0 }
 0x251   : > { %v605_v26 = vadd.f32 %v604_v25, %v569_v24 }
 0x253   : > { %v647_v29 = vadd.f32 %v641_v27, %v605_v26  ;;  %v3257_v26 = vld [vmem:[%s4380_s2 + $0x48] sm:$0xff] }
 0x255   : > { %v3387_v30 = vpop.eup %3386  ;;  %v2764_v31 = vmul.f32 -1.442695, %v647_v29 }
 0x256   : > { %v656_v32 = vadd.f32 1.0, %v3387_v30  ;;  %v3819_v30 = vsel %vm345_vm14, 1.0, %v3540_v9 }
 0x257   : > { %3388 = vpow2.f32 %v2764_v31 }
 0x258   : > { %3390 = vrcp.f32 %v656_v32  ;;  %v669_v49 = vand.u32 2147483648, %v656_v32  ;;  %vm663_vm6 = vweird.f32 %v656_v32  ;;  %v667_v50 = vand.u32 2147483647, %v656_v32 }
 0x25a   : > { %v670_v56 = vor.u32 1.1754944e-38, %v669_v49  ;;  %vm668_vm9 = vcmp.eq.f32.partialorder %v667_v50, 8.507059e+37 }
 0x25d   : > { %v3389_v34 = vpop.eup %3388 }
 0x25e   : > { %v3391_v35 = vpop.eup %3390  ;;  %v657_v36 = vadd.f32 1.0, %v3389_v34 }
 0x25f   : > { %v659_v37 = vmul.f32 %v3391_v35, %v656_v32  ;;  %vm664_vm5 = vweird.f32 %v3391_v35 }
 0x260   : > { %3392 = vrcp.f32 %v657_v36  ;;  %vm665_vm7 = vmor %vm663_vm6, %vm664_vm5  ;;  %v684_v52 = vand.u32 2147483648, %v657_v36  ;;  %v682_v55 = vand.u32 2147483647, %v657_v36  ;;  %vm678_vm10 = vweird.f32 %v657_v36 }
 0x261   : > { %v660_v40 = vsub.f32 1.0, %v659_v37  ;;  %3394 = vtanh.f32 %v644_v44  ;;  %v3825_v37 = vsel %vm351_vm15, 1.0, %v3540_v9 }
 0x262   : > { %3396 = vtanh.f32 %v645_v46  ;;  %v685_v59 = vor.u32 1.1754944e-38, %v684_v52  ;;  %vm683_vm12 = vcmp.eq.f32.partialorder %v682_v55, 8.507059e+37  ;;  %v3258_v52 = vld [vmem:[%s4380_s2 + $0x50] sm:$0xff] }
 0x263   : > { %v661_v42 = vmul.f32 %v3391_v35, %v660_v40 }
 0x265   : > { %v662_v47 = vadd.f32 %v3391_v35, %v661_v42 }
 0x266   : > { %v3393_v45 = vpop.eup %3392 }
 0x267   : > { %v674_v48 = vmul.f32 %v3393_v45, %v657_v36  ;;  %v666_v53 = vsel %vm665_vm7, %v3391_v35, %v662_v47  ;;  %vm679_vm8 = vweird.f32 %v3393_v45  ;;  %v3395_v60 = vpop.eup %3394 }
 0x268   : > { %v671_v58 = vsel %vm668_vm9, %v670_v56, %v666_v53  ;;  %vm680_vm11 = vmor %vm678_vm10, %vm679_vm8  ;;  %v3397_v62 = vpop.eup %3396  ;;  %v3255_v53 = vld [vmem:[%s4380_s2 + $0x38] sm:$0xff] }
 0x269   : > { %v675_v51 = vsub.f32 1.0, %v674_v48  ;;  %v688_v0 = vmul.f32 %v3395_v60, %v671_v58 }
 0x26b   : > { %v676_v54 = vmul.f32 %v3393_v45, %v675_v51 }
 0x26d   : > { %v677_v57 = vadd.f32 %v3393_v45, %v676_v54  ;;  %v3259_v54 = vld [vmem:[%s4380_s2 + $0x58] sm:$0xff] }
 0x26f   : > { %v681_v61 = vsel %vm680_vm11, %v3393_v45, %v677_v57 }
 0x270   : > { %v686_v63 = vsel %vm683_vm12, %v685_v59, %v681_v61 }
 0x271   : > { %v689_v1 = vmul.f32 %v3397_v62, %v686_v63 }
 0x273   : > { %v698_v2 = vpack.c.bf16 %v689_v1, %v688_v0 }
 0x275   : > { %739 = vmatpush.bf16.msrb.mxu2 %v698_v2 }
 0x278   : > { %2781 = vmatmul.msk.bf16.vlgmr.msrb.gmra.mxu2 %vm719_vm13, %v3250_v3 }
 0x288   : > { %2782 = vmatmul.msk.bf16.gmra.mxu2 %vm719_vm13, %v3251_v4 }
 0x298   : > { %2783 = vmatmul.msk.bf16.gmra.mxu2 %vm719_vm13, %v3252_v5 }
 0x2a8   : > { %2784 = vmatmul.msk.bf16.gmra.mxu2 %vm719_vm13, %v3253_v6 }
 0x2fb   : > { %v3769_v7 = vpop.f32.mrf.mxu2 }
 0x303   : > { %v3771_v11 = vpop.f32.mrf.mxu2 }
 0x30b   : > { %v3773_v12 = vpop.f32.mrf.mxu2 }
 0x313   : > { %v3775_v13 = vpop.f32.mrf.mxu2 }
 0x31b   : > { %v751_v14 = vpop.f32.mrf.mxu2 }
 0x31c   : > { %v765_v15 = vadd.f32 %v751_v14, %v3693_v28 }
 0x31e   : > { %v3778_v17 = vmul.f32 0.70710677, %v765_v15 }
 0x320   : > { %786 = vrot.lane.b32.xlu2 %v3778_v17, %s3541_s24 }
 0x323   : > { %v753_v18 = vpop.f32.mrf.mxu2 }
 0x324   : > { %v766_v28 = vadd.f32 %v753_v18, %v3697_v33 }
 0x326   : > { %v3791_v24 = vmul.f32 0.70710677, %v766_v28 }
 0x328   : > { %v812_v33 = vpack.c.bf16 %v3791_v24, %v3778_v17 }
 0x32b   : > { %v756_v19 = vpop.f32.mrf.mxu2 }
 0x32c   : > { %v767_v20 = vadd.f32 %v756_v19, %v3701_v38 }
 0x32e   : > { %v3783_v21 = vmul.f32 0.70710677, %v767_v20 }
 0x330   : > { %802 = vrot.lane.b32.xlu0 %v3783_v21, %s3542_s27  ;;  %790 = vrot.lane.b32.xlu1 %v3783_v21, %s3541_s24 }
 0x333   : > { %v758_v22 = vpop.f32.mrf.mxu2 }
 0x334   : > { %v768_v23 = vadd.f32 %v758_v22, %v3707_v43  ;;  %v3256_v43 = vld [vmem:[%s4380_s2 + $0x40] sm:$0xff] }
 0x336   : > { %v3793_v25 = vmul.f32 0.70710677, %v768_v23 }
 0x338   : > { %788 = vrot.lane.b32.xlu0 %v3791_v24, %s3541_s24  ;;  %804 = vrot.lane.b32.xlu1 %v3793_v25, %s3542_s27  ;;  %v813_v38 = vpack.c.bf16 %v3793_v25, %v3783_v21 }
 0x339   : > { %792 = vrot.lane.b32.xlu2 %v3793_v25, %s3541_s24 }
 0x33a   : > { %836 = vmatpush.bf16.msra.mxu3 %v813_v38 }
 0x33e   : > { %837 = vmatpush.bf16.msra.mxu3 %v812_v33 }
 0x340   : > { %798 = vrot.lane.b32.xlu1 %v3778_v17, %s3542_s27 }
 0x341   : > { %800 = vrot.lane.b32.xlu2 %v3791_v24, %s3542_s27  ;;  %2805 = vmatmul.msk.bf16.vlgmr.msra.gmra.mxu3 %vm546_vm4, %v3256_v43 }
 0x351   : > { %2806 = vmatmul.msk.bf16.gmra.mxu3 %vm546_vm4, %v3257_v26 }
 0x37a   : > { %v787_v27 = vpop.permute.xlu2 %786 }
 0x37b   : > { %v794_v41 = vmul.f32 %v3819_v30, %v787_v27 }
 0x393   : > { %v793_v29 = vpop.permute.xlu2 %792 }
 0x394   : > { %v797_v34 = vmul.f32 %v3819_v30, %v793_v29 }
 0x39b   : > { %v801_v9 = vpop.permute.xlu2 %800 }
 0x39c   : > { %v807_v49 = vmul.f32 %v3825_v37, %v801_v9 }
 0x3a2   : > { %v803_v31 = vpop.permute.xlu0 %802  ;;  %v791_v32 = vpop.permute.xlu1 %790 }
 0x3a3   : > { %v796_v35 = vmul.f32 %v3819_v30, %v791_v32  ;;  %v808_v42 = vmul.f32 %v3825_v37, %v803_v31 }
 0x3a5   : > { %v811_v36 = vpack.c.bf16 %v797_v34, %v796_v35 }
 0x3a7   : > { %871 = vmatpush.bf16.msra.mxu0 %v811_v36 }
 0x3aa   : > { %v789_v39 = vpop.permute.xlu0 %788  ;;  %v805_v40 = vpop.permute.xlu1 %804 }
 0x3ab   : > { %v795_v44 = vmul.f32 %v3819_v30, %v789_v39  ;;  %v809_v45 = vmul.f32 %v3825_v37, %v805_v40 }
 0x3ad   : > { %v810_v46 = vpack.c.bf16 %v795_v44, %v794_v41  ;;  %v885_v47 = vpack.c.bf16 %v809_v45, %v808_v42 }
 0x3af   : > { %872 = vmatpush.bf16.msra.mxu0 %v810_v46  ;;  %908 = vmatpush.bf16.msra.mxu1 %v885_v47 }
 0x3b2   : > { %v799_v48 = vpop.permute.xlu1 %798  ;;  %2815 = vmatmul.msk.bf16.vlgmr.msra.gmra.mxu0 %vm546_vm4, %v3254_v8 }
 0x3b3   : > { %v806_v50 = vmul.f32 %v3825_v37, %v799_v48 }
 0x3b5   : > { %v884_v51 = vpack.c.bf16 %v807_v49, %v806_v50 }
 0x3b7   : > { %909 = vmatpush.bf16.msra.mxu1 %v884_v51 }
 0x3ba   : > { %2825 = vmatmul.msk.bf16.vlgmr.msra.gmra.mxu1 %vm546_vm4, %v3258_v52 }
 0x3c2   : > { %2816 = vmatmul.msk.bf16.gmra.mxu0 %vm546_vm4, %v3255_v53 }
 0x3c4   : > { %v839_v55 = vpop.f32.mrf.mxu3 }
 0x3ca   : > { %2826 = vmatmul.msk.bf16.gmra.mxu1 %vm546_vm4, %v3259_v54  ;;  %v3260_v54 = vld [vmem:[%s4381_s3 + $0x20] sm:$0xff] }
 0x3cc   : > { %v841_v59 = vpop.f32.mrf.mxu3 }
 0x3d4   : > { %v844_v62 = vpop.f32.mrf.mxu3 }
 0x3dc   : > { %v846_v4 = vpop.f32.mrf.mxu3 }
 0x42f   : > { %v874_v56 = vpop.f32.mrf.mxu0 }
 0x430   : > { %v875_v38 = vadd.f32 %v874_v56, %v839_v55  ;;  %v3261_v55 = vld [vmem:[%s4381_s3 + $0x28] sm:$0xff]  ;;  %v3262_v56 = vld [vmem:[%s4381_s3 + $0x30] sm:$0xff] }
 0x437   : > { %v876_v57 = vpop.f32.mrf.mxu0  ;;  %v911_v58 = vpop.f32.mrf.mxu1 }
 0x438   : > { %v877_v26 = vadd.f32 %v876_v57, %v841_v59  ;;  %v921_v27 = vadd.f32 %v911_v58, %v875_v38  ;;  %v3263_v57 = vld [vmem:[%s4381_s3 + $0x38] sm:$0xff] }
 0x43f   : > { %v913_v60 = vpop.f32.mrf.mxu1  ;;  %v879_v61 = vpop.f32.mrf.mxu0 }
 0x440   : > { %v880_v63 = vadd.f32 %v879_v61, %v844_v62  ;;  %v922_v31 = vadd.f32 %v913_v60, %v877_v26 }
 0x447   : > { %v916_v0 = vpop.f32.mrf.mxu1  ;;  %v881_v3 = vpop.f32.mrf.mxu0 }
 0x448   : > { %v923_v1 = vadd.f32 %v916_v0, %v880_v63  ;;  %v882_v5 = vadd.f32 %v881_v3, %v846_v4 }
 0x44a   : > { %v2827_v2 = vmul.f32 -1.442695, %v923_v1 }
 0x44c   : > { %3398 = vpow2.f32 %v2827_v2 }
 0x44f   : > { %v918_v6 = vpop.f32.mrf.mxu1 }
 0x450   : > { %v924_v14 = vadd.f32 %v918_v6, %v882_v5 }
 0x452   : > { %v3399_v15 = vpop.eup %3398  ;;  %v2828_v18 = vmul.f32 -1.442695, %v924_v14 }
 0x453   : > { %v933_v19 = vadd.f32 1.0, %v3399_v15 }
 0x454   : > { %3400 = vpow2.f32 %v2828_v18  ;;  %v3267_v18 = vld [vmem:[%s4380_s2 + $0x78] sm:$0xff] }
 0x455   : > { %3402 = vrcp.f32 %v933_v19  ;;  %v946_v35 = vand.u32 2147483648, %v933_v19  ;;  %vm940_vm1 = vweird.f32 %v933_v19  ;;  %v944_v39 = vand.u32 2147483647, %v933_v19 }
 0x457   : > { %v947_v45 = vor.u32 1.1754944e-38, %v946_v35  ;;  %vm945_vm5 = vcmp.eq.f32.partialorder %v944_v39, 8.507059e+37 }
 0x45a   : > { %v3401_v20 = vpop.eup %3400 }
 0x45b   : > { %v3403_v28 = vpop.eup %3402  ;;  %v934_v22 = vadd.f32 1.0, %v3401_v20 }
 0x45c   : > { %v936_v23 = vmul.f32 %v3403_v28, %v933_v19  ;;  %vm941_vm0 = vweird.f32 %v3403_v28 }
 0x45d   : > { %3404 = vrcp.f32 %v934_v22  ;;  %vm942_vm2 = vmor %vm940_vm1, %vm941_vm0  ;;  %v961_v40 = vand.u32 2147483648, %v934_v22  ;;  %v959_v44 = vand.u32 2147483647, %v934_v22  ;;  %vm955_vm6 = vweird.f32 %v934_v22 }
 0x45e   : > { %v937_v33 = vsub.f32 1.0, %v936_v23  ;;  %3406 = vtanh.f32 %v921_v27 }
 0x45f   : > { %3408 = vtanh.f32 %v922_v31  ;;  %v962_v8 = vor.u32 1.1754944e-38, %v961_v40  ;;  %vm960_vm8 = vcmp.eq.f32.partialorder %v959_v44, 8.507059e+37 }
 0x460   : > { %v938_v43 = vmul.f32 %v3403_v28, %v937_v33 }
 0x462   : > { %v939_v34 = vadd.f32 %v3403_v28, %v938_v43 }
 0x463   : > { %v3405_v29 = vpop.eup %3404 }
 0x464   : > { %v951_v32 = vmul.f32 %v3405_v29, %v934_v22  ;;  %v943_v41 = vsel %vm942_vm2, %v3403_v28, %v939_v34  ;;  %vm956_vm3 = vweird.f32 %v3405_v29  ;;  %v3407_v9 = vpop.eup %3406 }
 0x465   : > { %v948_v47 = vsel %vm945_vm5, %v947_v45, %v943_v41  ;;  %vm957_vm7 = vmor %vm955_vm6, %vm956_vm3  ;;  %v3409_v49 = vpop.eup %3408  ;;  %v3268_v41 = vld [vmem:[%s4380_s2 + $0x80] sm:$0xff] }
 0x466   : > { %v952_v36 = vsub.f32 1.0, %v951_v32  ;;  %v965_v51 = vmul.f32 %v3407_v9, %v948_v47  ;;  %v3264_v45 = vld [vmem:[%s4380_s2 + $0x60] sm:$0xff]  ;;  %v3265_v47 = vld [vmem:[%s4380_s2 + $0x68] sm:$0xff] }
 0x468   : > { %v953_v42 = vmul.f32 %v3405_v29, %v952_v36 }
 0x46a   : > { %v954_v46 = vadd.f32 %v3405_v29, %v953_v42 }
 0x46c   : > { %v958_v48 = vsel %vm957_vm7, %v3405_v29, %v954_v46  ;;  %v3269_v46 = vld [vmem:[%s4380_s2 + $0x88] sm:$0xff] }
 0x46d   : > { %v963_v50 = vsel %vm960_vm8, %v962_v8, %v958_v48 }
 0x46e   : > { %v966_v52 = vmul.f32 %v3409_v49, %v963_v50 }
 0x470   : > { %v976_v53 = vpack.c.bf16 %v966_v52, %v965_v51 }
 0x472   : > { %1016 = vmatpush.bf16.msrb.mxu3 %v976_v53 }
 0x475   : > { %2853 = vmatmul.msk.bf16.vlgmr.msrb.gmra.mxu3 %vm719_vm13, %v3260_v54 }
 0x485   : > { %2854 = vmatmul.msk.bf16.gmra.mxu3 %vm719_vm13, %v3261_v55 }
 0x495   : > { %2855 = vmatmul.msk.bf16.gmra.mxu3 %vm719_vm13, %v3262_v56 }
 0x4a5   : > { %2856 = vmatmul.msk.bf16.gmra.mxu3 %vm719_vm13, %v3263_v57 }
 0x4f8   : > { %v3865_v58 = vpop.f32.mrf.mxu3 }
 0x500   : > { %v3867_v59 = vpop.f32.mrf.mxu3 }
 0x508   : > { %v3869_v60 = vpop.f32.mrf.mxu3 }
 0x510   : > { %v3871_v61 = vpop.f32.mrf.mxu3 }
 0x518   : > { %v1028_v62 = vpop.f32.mrf.mxu3 }
 0x519   : > { %v1042_v63 = vadd.f32 %v1028_v62, %v3778_v17 }
 0x51b   : > { %v3874_v0 = vmul.f32 0.70710677, %v1042_v63 }
 0x51d   : > { %1075 = vrot.lane.b32.xlu1 %v3874_v0, %s3538_s25 }
 0x520   : > { %v1030_v1 = vpop.f32.mrf.mxu3 }
 0x521   : > { %v1043_v5 = vadd.f32 %v1030_v1, %v3791_v24 }
 0x523   : > { %v3887_v14 = vmul.f32 0.70710677, %v1043_v5 }
 0x525   : > { %v1089_v24 = vpack.c.bf16 %v3887_v14, %v3874_v0 }
 0x528   : > { %v1033_v2 = vpop.f32.mrf.mxu3 }
 0x529   : > { %v1044_v3 = vadd.f32 %v1033_v2, %v3783_v21 }
 0x52b   : > { %v3879_v4 = vmul.f32 0.70710677, %v1044_v3 }
 0x52d   : > { %1067 = vrot.lane.b32.xlu2 %v3879_v4, %s3539_s26  ;;  %1079 = vrot.lane.b32.xlu0 %v3879_v4, %s3538_s25 }
 0x530   : > { %v1035_v17 = vpop.f32.mrf.mxu3 }
 0x531   : > { %v1045_v6 = vadd.f32 %v1035_v17, %v3793_v25  ;;  %v3266_v25 = vld [vmem:[%s4380_s2 + $0x70] sm:$0xff] }
 0x533   : > { %v3889_v15 = vmul.f32 0.70710677, %v1045_v6 }
 0x535   : > { %1077 = vrot.lane.b32.xlu2 %v3887_v14, %s3538_s25  ;;  %1069 = vrot.lane.b32.xlu0 %v3889_v15, %s3539_s26  ;;  %v1090_v21 = vpack.c.bf16 %v3889_v15, %v3879_v4 }
 0x536   : > { %1081 = vrot.lane.b32.xlu1 %v3889_v15, %s3538_s25 }
 0x537   : > { %1113 = vmatpush.bf16.msrb.mxu0 %v1090_v21 }
 0x53b   : > { %1114 = vmatpush.bf16.msrb.mxu0 %v1089_v24 }
 0x53d   : > { %1063 = vrot.lane.b32.xlu0 %v3874_v0, %s3539_s26 }
 0x53e   : > { %1065 = vrot.lane.b32.xlu1 %v3887_v14, %s3539_s26  ;;  %2877 = vmatmul.msk.bf16.vlgmr.msrb.gmra.mxu0 %vm546_vm4, %v3266_v25 }
 0x54e   : > { %2878 = vmatmul.msk.bf16.gmra.mxu0 %vm546_vm4, %v3267_v18 }
 0x587   : > { %v1068_v19 = vpop.permute.xlu2 %1067 }
 0x588   : > { %v1073_v23 = vmul.f32 %v3676_v16, %v1068_v19 }
 0x58f   : > { %v1076_v28 = vpop.permute.xlu1 %1075  ;;  %v1078_v38 = vpop.permute.xlu2 %1077 }
 0x590   : > { %v1083_v31 = vmul.f32 %v3667_v10, %v1076_v28  ;;  %v1084_v32 = vmul.f32 %v3667_v10, %v1078_v38 }
 0x592   : > { %v1161_v35 = vpack.c.bf16 %v1084_v32, %v1083_v31 }
 0x59f   : > { %v1080_v20 = vpop.permute.xlu0 %1079 }
 0x5a0   : > { %v1085_v26 = vmul.f32 %v3667_v10, %v1080_v20 }
 0x5a7   : > { %v1070_v22 = vpop.permute.xlu0 %1069 }
 0x5a8   : > { %v1074_v33 = vmul.f32 %v3676_v16, %v1070_v22  ;;  %v1082_v43 = vpop.permute.xlu1 %1081 }
 0x5a9   : > { %v1086_v27 = vmul.f32 %v3667_v10, %v1082_v43 }
 0x5aa   : > { %v1088_v29 = vpack.c.bf16 %v1074_v33, %v1073_v23 }
 0x5ab   : > { %v1162_v34 = vpack.c.bf16 %v1086_v27, %v1085_v26 }
 0x5ac   : > { %1148 = vmatpush.bf16.msrb.mxu1 %v1088_v29 }
 0x5ad   : > { %1185 = vmatpush.bf16.msra.mxu2 %v1162_v34 }
 0x5af   : > { %v1064_v36 = vpop.permute.xlu0 %1063 }
 0x5b0   : > { %v1071_v39 = vmul.f32 %v3676_v16, %v1064_v36  ;;  %v1066_v40 = vpop.permute.xlu1 %1065 }
 0x5b1   : > { %v1072_v42 = vmul.f32 %v3676_v16, %v1066_v40  ;;  %1186 = vmatpush.bf16.msra.mxu2 %v1161_v35 }
 0x5b3   : > { %v1087_v44 = vpack.c.bf16 %v1072_v42, %v1071_v39 }
 0x5b4   : > { %2897 = vmatmul.msk.bf16.vlgmr.msra.gmra.mxu2 %vm546_vm4, %v3268_v41 }
 0x5b5   : > { %1149 = vmatpush.bf16.msrb.mxu1 %v1087_v44 }
 0x5b8   : > { %2887 = vmatmul.msk.bf16.vlgmr.msrb.gmra.mxu1 %vm546_vm4, %v3264_v45 }
 0x5bb   : > { %v1116_v8 = vpop.f32.mrf.mxu0 }
 0x5c3   : > { %v1118_v49 = vpop.f32.mrf.mxu0 }
 0x5c4   : > { %2898 = vmatmul.msk.bf16.gmra.mxu2 %vm546_vm4, %v3269_v46 }
 0x5c8   : > { %2888 = vmatmul.msk.bf16.gmra.mxu1 %vm546_vm4, %v3265_v47 }
 0x5cb   : > { %v1121_v52 = vpop.f32.mrf.mxu0 }
 0x5d3   : > { %v1123_v62 = vpop.f32.mrf.mxu0 }
 0x635   : > { %v1151_v9 = vpop.f32.mrf.mxu1 }
 0x636   : > { %v1152_v19 = vadd.f32 %v1151_v9, %v1116_v8 }
 0x637   : > { %v1188_v48 = vpop.f32.mrf.mxu2 }
 0x638   : > { %v1198_v23 = vadd.f32 %v1188_v48, %v1152_v19 }
 0x63d   : > { %v1153_v50 = vpop.f32.mrf.mxu1 }
 0x63e   : > { %v1154_v28 = vadd.f32 %v1153_v50, %v1118_v49  ;;  %v3270_v49 = vld [vmem:[%s4381_s3 + $0x40] sm:$0xff]  ;;  %v3271_v50 = vld [vmem:[%s4381_s3 + $0x48] sm:$0xff] }
 0x63f   : > { %v1190_v51 = vpop.f32.mrf.mxu2 }
 0x640   : > { %v1199_v33 = vadd.f32 %v1190_v51, %v1154_v28  ;;  %v3272_v51 = vld [vmem:[%s4381_s3 + $0x50] sm:$0xff] }
 0x645   : > { %v1156_v53 = vpop.f32.mrf.mxu1 }
 0x646   : > { %v1157_v54 = vadd.f32 %v1156_v53, %v1121_v52  ;;  %v3273_v52 = vld [vmem:[%s4381_s3 + $0x58] sm:$0xff]  ;;  %v1038_v53 = vadd.f32 %v3865_v58, %v3769_v7 }
 0x647   : > { %v1193_v55 = vpop.f32.mrf.mxu2 }
 0x648   : > { %v1200_v56 = vadd.f32 %v1193_v55, %v1157_v54 }
 0x64a   : > { %v2899_v57 = vmul.f32 -1.442695, %v1200_v56 }
 0x64c   : > { %3410 = vpow2.f32 %v2899_v57  ;;  %v1040_v57 = vadd.f32 %v3869_v60, %v3773_v12 }
 0x64d   : > { %v1158_v63 = vpop.f32.mrf.mxu1 }
 0x64e   : > { %v1159_v1 = vadd.f32 %v1158_v63, %v1123_v62 }
 0x64f   : > { %v1195_v2 = vpop.f32.mrf.mxu2 }
 0x650   : > { %v1201_v3 = vadd.f32 %v1195_v2, %v1159_v1 }
 0x652   : > { %v3411_v5 = vpop.eup %3410  ;;  %v2900_v17 = vmul.f32 -1.442695, %v1201_v3 }
 0x653   : > { %v1210_v6 = vadd.f32 1.0, %v3411_v5 }
 0x654   : > { %3412 = vpow2.f32 %v2900_v17 }
 0x655   : > { %3414 = vrcp.f32 %v1210_v6  ;;  %v1223_v27 = vand.u32 2147483648, %v1210_v6  ;;  %vm1217_vm10 = vweird.f32 %v1210_v6  ;;  %v1221_v31 = vand.u32 2147483647, %v1210_v6 }
 0x657   : > { %v1224_v39 = vor.u32 1.1754944e-38, %v1223_v27  ;;  %vm1222_vm14 = vcmp.eq.f32.partialorder %v1221_v31, 8.507059e+37 }
 0x65a   : > { %v3413_v21 = vpop.eup %3412 }
 0x65b   : > { %v3415_v24 = vpop.eup %3414  ;;  %v1211_v25 = vadd.f32 1.0, %v3413_v21 }
 0x65c   : > { %v1213_v18 = vmul.f32 %v3415_v24, %v1210_v6  ;;  %vm1218_vm9 = vweird.f32 %v3415_v24 }
 0x65d   : > { %3416 = vrcp.f32 %v1211_v25  ;;  %vm1219_vm11 = vmor %vm1217_vm10, %vm1218_vm9  ;;  %v1238_v32 = vand.u32 2147483648, %v1211_v25  ;;  %v1236_v36 = vand.u32 2147483647, %v1211_v25  ;;  %vm1232_vm15 = vweird.f32 %v1211_v25 }
 0x65e   : > { %v1214_v20 = vsub.f32 1.0, %v1213_v18  ;;  %3418 = vtanh.f32 %v1198_v23  ;;  %v3277_v23 = vld [vmem:[%s4380_s2 + $0xa8] sm:$0xff] }
 0x65f   : > { %3420 = vtanh.f32 %v1199_v33  ;;  %v1239_v42 = vor.u32 1.1754944e-38, %v1238_v32  ;;  %vm1237_vm1 = vcmp.eq.f32.partialorder %v1236_v36, 8.507059e+37 }
 0x660   : > { %v1215_v22 = vmul.f32 %v3415_v24, %v1214_v20 }
 0x662   : > { %v1216_v26 = vadd.f32 %v3415_v24, %v1215_v22 }
 0x663   : > { %v3417_v38 = vpop.eup %3416 }
 0x664   : > { %v1228_v43 = vmul.f32 %v3417_v38, %v1211_v25  ;;  %v1220_v34 = vsel %vm1219_vm11, %v3415_v24, %v1216_v26  ;;  %vm1233_vm12 = vweird.f32 %v3417_v38  ;;  %v3419_v44 = vpop.eup %3418 }
 0x665   : > { %v1225_v41 = vsel %vm1222_vm14, %v1224_v39, %v1220_v34  ;;  %vm1234_vm0 = vmor %vm1232_vm15, %vm1233_vm12  ;;  %v3421_v46 = vpop.eup %3420  ;;  %v3274_v39 = vld [vmem:[%s4380_s2 + $0x90] sm:$0xff] }
 0x666   : > { %v1229_v29 = vsub.f32 1.0, %v1228_v43  ;;  %v1242_v8 = vmul.f32 %v3419_v44, %v1225_v41  ;;  %v3278_v44 = vld [vmem:[%s4380_s2 + $0xb0] sm:$0xff] }
 0x668   : > { %v1230_v35 = vmul.f32 %v3417_v38, %v1229_v29 }
 0x66a   : > { %v1231_v40 = vadd.f32 %v3417_v38, %v1230_v35 }
 0x66c   : > { %v1235_v45 = vsel %vm1234_vm0, %v3417_v38, %v1231_v40 }
 0x66d   : > { %v1240_v47 = vsel %vm1237_vm1, %v1239_v42, %v1235_v45  ;;  %v3275_v45 = vld [vmem:[%s4380_s2 + $0x98] sm:$0xff] }
 0x66e   : > { %v1243_v9 = vmul.f32 %v3421_v46, %v1240_v47  ;;  %v3279_v46 = vld [vmem:[%s4380_s2 + $0xb8] sm:$0xff] }
 0x670   : > { %v1253_v48 = vpack.c.bf16 %v1243_v9, %v1242_v8 }
 0x672   : > { %1293 = vmatpush.bf16.msra.mxu0 %v1253_v48 }
 0x675   : > { %2925 = vmatmul.msk.bf16.vlgmr.msra.gmra.mxu0 %vm719_vm13, %v3270_v49 }
 0x685   : > { %2926 = vmatmul.msk.bf16.gmra.mxu0 %vm719_vm13, %v3271_v50 }
 0x695   : > { %2927 = vmatmul.msk.bf16.gmra.mxu0 %vm719_vm13, %v3272_v51 }
 0x6a5   : > { %2928 = vmatmul.msk.bf16.gmra.mxu0 %vm719_vm13, %v3273_v52 }
 0x6f2   : > { %v1295_v54 = vpop.f32.mrf.mxu0 }
 0x6f3   : > { %v3955_v55 = vadd.f32 %v1295_v54, %v1038_v53 }
 0x6fa   : > { %v3957_v56 = vpop.f32.mrf.mxu0 }
 0x702   : > { %v1300_v62 = vpop.f32.mrf.mxu0 }
 0x703   : > { %v3961_v63 = vadd.f32 %v1300_v62, %v1040_v57 }
 0x70a   : > { %v3963_v1 = vpop.f32.mrf.mxu0 }
 0x712   : > { %v1305_v2 = vpop.f32.mrf.mxu0 }
 0x713   : > { %v1319_v3 = vadd.f32 %v1305_v2, %v3874_v0 }
 0x715   : > { %v3966_v5 = vmul.f32 0.70710677, %v1319_v3 }
 0x717   : > { %1340 = vrot.lane.b32.xlu0 %v3966_v5, %s3541_s24 }
 0x71a   : > { %v1307_v7 = vpop.f32.mrf.mxu0 }
 0x71b   : > { %v1320_v12 = vadd.f32 %v1307_v7, %v3887_v14 }
 0x71d   : > { %v3979_v21 = vmul.f32 0.70710677, %v1320_v12 }
 0x71f   : > { %v1366_v14 = vpack.c.bf16 %v3979_v21, %v3966_v5 }
 0x722   : > { %v1310_v58 = vpop.f32.mrf.mxu0 }
 0x723   : > { %v1321_v17 = vadd.f32 %v1310_v58, %v3879_v4 }
 0x725   : > { %v3971_v6 = vmul.f32 0.70710677, %v1321_v17 }
 0x727   : > { %1356 = vrot.lane.b32.xlu1 %v3971_v6, %s3542_s27  ;;  %1344 = vrot.lane.b32.xlu2 %v3971_v6, %s3541_s24 }
 0x72a   : > { %v1312_v60 = vpop.f32.mrf.mxu0 }
 0x72b   : > { %v1322_v0 = vadd.f32 %v1312_v60, %v3889_v15  ;;  %v3276_v15 = vld [vmem:[%s4380_s2 + $0xa0] sm:$0xff] }
 0x72d   : > { %v3981_v24 = vmul.f32 0.70710677, %v1322_v0 }
 0x72f   : > { %1342 = vrot.lane.b32.xlu1 %v3979_v21, %s3541_s24  ;;  %1358 = vrot.lane.b32.xlu2 %v3981_v24, %s3542_s27  ;;  %v1367_v4 = vpack.c.bf16 %v3981_v24, %v3971_v6 }
 0x730   : > { %1346 = vrot.lane.b32.xlu0 %v3981_v24, %s3541_s24 }
 0x731   : > { %1390 = vmatpush.bf16.msra.mxu1 %v1367_v4 }
 0x735   : > { %1391 = vmatpush.bf16.msra.mxu1 %v1366_v14 }
 0x737   : > { %1352 = vrot.lane.b32.xlu2 %v3966_v5, %s3542_s27 }
 0x738   : > { %1354 = vrot.lane.b32.xlu0 %v3979_v21, %s3542_s27  ;;  %2949 = vmatmul.msk.bf16.vlgmr.msra.gmra.mxu1 %vm546_vm4, %v3276_v15 }
 0x748   : > { %2950 = vmatmul.msk.bf16.gmra.mxu1 %vm546_vm4, %v3277_v23 }
 0x781   : > { %v1345_v25 = vpop.permute.xlu2 %1344 }
 0x782   : > { %v1350_v26 = vmul.f32 %v3819_v30, %v1345_v25 }
 0x789   : > { %v1359_v18 = vpop.permute.xlu2 %1358  ;;  %v1341_v20 = vpop.permute.xlu0 %1340 }
 0x78a   : > { %v1363_v28 = vmul.f32 %v3825_v37, %v1359_v18  ;;  %v1348_v32 = vmul.f32 %v3819_v30, %v1341_v20 }
 0x791   : > { %v1353_v34 = vpop.permute.xlu2 %1352 }
 0x792   : > { %v1360_v40 = vmul.f32 %v3825_v37, %v1353_v34 }
 0x799   : > { %v1357_v19 = vpop.permute.xlu1 %1356 }
 0x79a   : > { %v1362_v22 = vmul.f32 %v3825_v37, %v1357_v19 }
 0x79c   : > { %v1439_v38 = vpack.c.bf16 %v1363_v28, %v1362_v22 }
 0x79e   : > { %1462 = vmatpush.bf16.msra.mxu3 %v1439_v38 }
 0x7a1   : > { %v1343_v33 = vpop.permute.xlu1 %1342 }
 0x7a2   : > { %v1347_v43 = vpop.permute.xlu0 %1346  ;;  %v1349_v29 = vmul.f32 %v3819_v30, %v1343_v33 }
 0x7a3   : > { %v1351_v27 = vmul.f32 %v3819_v30, %v1347_v43 }
 0x7a4   : > { %v1364_v35 = vpack.c.bf16 %v1349_v29, %v1348_v32 }
 0x7a5   : > { %v1365_v31 = vpack.c.bf16 %v1351_v27, %v1350_v26 }
 0x7a7   : > { %1425 = vmatpush.bf16.msrb.mxu2 %v1365_v31 }
 0x7aa   : > { %v1355_v36 = vpop.permute.xlu0 %1354 }
 0x7ab   : > { %v1361_v41 = vmul.f32 %v3825_v37, %v1355_v36  ;;  %1426 = vmatpush.bf16.msrb.mxu2 %v1364_v35 }
 0x7ad   : > { %v1438_v42 = vpack.c.bf16 %v1361_v41, %v1360_v40 }
 0x7ae   : > { %2959 = vmatmul.msk.bf16.vlgmr.msrb.gmra.mxu2 %vm546_vm4, %v3274_v39 }
 0x7af   : > { %1463 = vmatpush.bf16.msra.mxu3 %v1438_v42 }
 0x7b2   : > { %2969 = vmatmul.msk.bf16.vlgmr.msra.gmra.mxu3 %vm546_vm4, %v3278_v44 }
 0x7b5   : > { %v1393_v47 = vpop.f32.mrf.mxu1 }
 0x7bd   : > { %v1395_v48 = vpop.f32.mrf.mxu1 }
 0x7be   : > { %2960 = vmatmul.msk.bf16.gmra.mxu2 %vm546_vm4, %v3275_v45 }
 0x7c2   : > { %2970 = vmatmul.msk.bf16.gmra.mxu3 %vm546_vm4, %v3279_v46 }
 0x7c5   : > { %v1398_v51 = vpop.f32.mrf.mxu1 }
 0x7cd   : > { %v1400_v3 = vpop.f32.mrf.mxu1 }
 0x831   : > { %v1428_v8 = vpop.f32.mrf.mxu2 }
 0x832   : > { %v1429_v18 = vadd.f32 %v1428_v8, %v1393_v47 }
 0x835   : > { %v1465_v9 = vpop.f32.mrf.mxu3 }
 0x836   : > { %v1475_v22 = vadd.f32 %v1465_v9, %v1429_v18 }
 0x839   : > { %v1430_v49 = vpop.f32.mrf.mxu2 }
 0x83a   : > { %v1431_v28 = vadd.f32 %v1430_v49, %v1395_v48  ;;  %v3280_v48 = vld [vmem:[%s4381_s3 + $0x60] sm:$0xff]  ;;  %v3281_v49 = vld [vmem:[%s4381_s3 + $0x68] sm:$0xff] }
 0x83d   : > { %v1467_v50 = vpop.f32.mrf.mxu3 }
 0x83e   : > { %v1476_v38 = vadd.f32 %v1467_v50, %v1431_v28  ;;  %v3282_v50 = vld [vmem:[%s4381_s3 + $0x70] sm:$0xff] }
 0x841   : > { %v1433_v52 = vpop.f32.mrf.mxu2 }
 0x842   : > { %v1434_v53 = vadd.f32 %v1433_v52, %v1398_v51  ;;  %v3283_v51 = vld [vmem:[%s4381_s3 + $0x78] sm:$0xff] }
 0x845   : > { %v1470_v54 = vpop.f32.mrf.mxu3 }
 0x846   : > { %v1477_v57 = vadd.f32 %v1470_v54, %v1434_v53 }
 0x848   : > { %v2971_v62 = vmul.f32 -1.442695, %v1477_v57 }
 0x849   : > { %v1435_v2 = vpop.f32.mrf.mxu2 }
 0x84a   : > { %3422 = vpow2.f32 %v2971_v62  ;;  %v1436_v7 = vadd.f32 %v1435_v2, %v1400_v3 }
 0x84d   : > { %v1472_v58 = vpop.f32.mrf.mxu3 }
 0x84e   : > { %v1478_v17 = vadd.f32 %v1472_v58, %v1436_v7 }
 0x850   : > { %v3423_v12 = vpop.eup %3422  ;;  %v2972_v60 = vmul.f32 -1.442695, %v1478_v17 }
 0x851   : > { %v1487_v0 = vadd.f32 1.0, %v3423_v12 }
 0x852   : > { %3424 = vpow2.f32 %v2972_v60 }
 0x853   : > { %3426 = vrcp.f32 %v1487_v0  ;;  %v1500_v26 = vand.u32 2147483648, %v1487_v0  ;;  %vm1494_vm3 = vweird.f32 %v1487_v0  ;;  %v1498_v29 = vand.u32 2147483647, %v1487_v0 }
 0x855   : > { %v1501_v36 = vor.u32 1.1754944e-38, %v1500_v26  ;;  %vm1499_vm8 = vcmp.eq.f32.partialorder %v1498_v29, 8.507059e+37 }
 0x858   : > { %v3425_v4 = vpop.eup %3424 }
 0x859   : > { %v3427_v14 = vpop.eup %3426  ;;  %v1488_v15 = vadd.f32 1.0, %v3425_v4 }
 0x85a   : > { %v1490_v25 = vmul.f32 %v3427_v14, %v1487_v0  ;;  %vm1495_vm2 = vweird.f32 %v3427_v14 }
 0x85b   : > { %3428 = vrcp.f32 %v1488_v15  ;;  %vm1496_vm5 = vmor %vm1494_vm3, %vm1495_vm2  ;;  %v1515_v31 = vand.u32 2147483648, %v1488_v15  ;;  %v1513_v35 = vand.u32 2147483647, %v1488_v15  ;;  %vm1509_vm7 = vweird.f32 %v1488_v15 }
 0x85c   : > { %v1491_v19 = vsub.f32 1.0, %v1490_v25  ;;  %3430 = vtanh.f32 %v1475_v22 }
 0x85d   : > { %3432 = vtanh.f32 %v1476_v38  ;;  %v1516_v41 = vor.u32 1.1754944e-38, %v1515_v31  ;;  %vm1514_vm10 = vcmp.eq.f32.partialorder %v1513_v35, 8.507059e+37 }
 0x85e   : > { %v1492_v20 = vmul.f32 %v3427_v14, %v1491_v19 }
 0x860   : > { %v1493_v43 = vadd.f32 %v3427_v14, %v1492_v20 }
 0x861   : > { %v3429_v23 = vpop.eup %3428 }
 0x862   : > { %v1505_v33 = vmul.f32 %v3429_v23, %v1488_v15  ;;  %v1497_v34 = vsel %vm1496_vm5, %v3427_v14, %v1493_v43  ;;  %vm1510_vm6 = vweird.f32 %v3429_v23  ;;  %v3431_v42 = vpop.eup %3430  ;;  %v3287_v15 = vld [vmem:[%s4380_s2 + $0xd8] sm:$0xff] }
 0x863   : > { %v1502_v40 = vsel %vm1499_vm8, %v1501_v36, %v1497_v34  ;;  %vm1511_vm9 = vmor %vm1509_vm7, %vm1510_vm6  ;;  %v3433_v45 = vpop.eup %3432  ;;  %v3284_v34 = vld [vmem:[%s4380_s2 + $0xc0] sm:$0xff] }
 0x864   : > { %v1506_v27 = vsub.f32 1.0, %v1505_v33  ;;  %v1519_v47 = vmul.f32 %v3431_v42, %v1502_v40  ;;  %v3288_v42 = vld [vmem:[%s4380_s2 + $0xe0] sm:$0xff] }
 0x866   : > { %v1507_v32 = vmul.f32 %v3429_v23, %v1506_v27 }
 0x868   : > { %v1508_v39 = vadd.f32 %v3429_v23, %v1507_v32 }
 0x86a   : > { %v1512_v44 = vsel %vm1511_vm9, %v3429_v23, %v1508_v39 }
 0x86b   : > { %v1517_v46 = vsel %vm1514_vm10, %v1516_v41, %v1512_v44  ;;  %v3285_v44 = vld [vmem:[%s4380_s2 + $0xc8] sm:$0xff] }
 0x86c   : > { %v1520_v8 = vmul.f32 %v3433_v45, %v1517_v46  ;;  %v3289_v45 = vld [vmem:[%s4380_s2 + $0xe8] sm:$0xff] }
 0x86e   : > { %v1530_v9 = vpack.c.bf16 %v1520_v8, %v1519_v47 }
 0x870   : > { %1570 = vmatpush.bf16.msrb.mxu1 %v1530_v9 }
 0x873   : > { %2997 = vmatmul.msk.bf16.vlgmr.msrb.gmra.mxu1 %vm719_vm13, %v3280_v48 }
 0x883   : > { %2998 = vmatmul.msk.bf16.gmra.mxu1 %vm719_vm13, %v3281_v49 }
 0x893   : > { %2999 = vmatmul.msk.bf16.gmra.mxu1 %vm719_vm13, %v3282_v50 }
 0x8a3   : > { %3000 = vmatmul.msk.bf16.gmra.mxu1 %vm719_vm13, %v3283_v51 }
 0x8f0   : > { %v1572_v52 = vpop.f32.mrf.mxu1 }
 0x8f1   : > { %v4046_v53 = vadd.f32 %v1572_v52, %v3955_v55 }
 0x8f8   : > { %v4048_v54 = vpop.f32.mrf.mxu1 }
 0x900   : > { %v1577_v57 = vpop.f32.mrf.mxu1 }
 0x901   : > { %v4051_v62 = vadd.f32 %v1577_v57, %v3961_v63 }
 0x908   : > { %v4053_v2 = vpop.f32.mrf.mxu1 }
 0x910   : > { %v1582_v3 = vpop.f32.mrf.mxu1 }
 0x911   : > { %v1596_v7 = vadd.f32 %v1582_v3, %v3966_v5 }
 0x913   : > { %v4056_v58 = vmul.f32 0.70710677, %v1596_v7 }
 0x915   : > { %1617 = vrot.lane.b32.xlu0 %v4056_v58, %s3539_s26 }
 0x918   : > { %v1584_v17 = vpop.f32.mrf.mxu1 }
 0x919   : > { %v1597_v63 = vadd.f32 %v1584_v17, %v3979_v21 }
 0x91b   : > { %v4067_v5 = vmul.f32 0.70710677, %v1597_v63 }
 0x91d   : > { %v1643_v21 = vpack.c.bf16 %v4067_v5, %v4056_v58 }
 0x920   : > { %v1587_v12 = vpop.f32.mrf.mxu1 }
 0x921   : > { %v1598_v55 = vadd.f32 %v1587_v12, %v3971_v6 }
 0x923   : > { %v4061_v60 = vmul.f32 0.70710677, %v1598_v55 }
 0x925   : > { %1621 = vrot.lane.b32.xlu1 %v4061_v60, %s3539_s26 }
 0x928   : > { %v1589_v0 = vpop.f32.mrf.mxu1 }
 0x929   : > { %v1599_v4 = vadd.f32 %v1589_v0, %v3981_v24  ;;  %v3286_v24 = vld [vmem:[%s4380_s2 + $0xd0] sm:$0xff] }
 0x92b   : > { %v4069_v14 = vmul.f32 0.70710677, %v1599_v4 }
 0x92d   : > { %1619 = vrot.lane.b32.xlu1 %v4067_v5, %s3539_s26  ;;  %1635 = vrot.lane.b32.xlu0 %v4069_v14, %s3538_s25  ;;  %v1644_v6 = vpack.c.bf16 %v4069_v14, %v4061_v60 }
 0x92e   : > { %1623 = vrot.lane.b32.xlu2 %v4069_v14, %s3539_s26 }
 0x92f   : > { %1667 = vmatpush.bf16.msra.mxu2 %v1644_v6 }
 0x933   : > { %1668 = vmatpush.bf16.msra.mxu2 %v1643_v21 }
 0x935   : > { %1629 = vrot.lane.b32.xlu1 %v4056_v58, %s3538_s25 }
 0x936   : > { %1633 = vrot.lane.b32.xlu2 %v4061_v60, %s3538_s25  ;;  %3021 = vmatmul.msk.bf16.vlgmr.msra.gmra.mxu2 %vm546_vm4, %v3286_v24 }
 0x93e   : > { %1631 = vrot.lane.b32.xlu2 %v4067_v5, %s3538_s25 }
 0x946   : > { %3022 = vmatmul.msk.bf16.gmra.mxu2 %vm546_vm4, %v3287_v15 }
 0x987   : > { %v1618_v18 = vpop.permute.xlu0 %1617 }
 0x988   : > { %v1624_v25 = vpop.permute.xlu2 %1623  ;;  %v1625_v43 = vmul.f32 %v3676_v16, %v1618_v18 }
 0x989   : > { %v1628_v20 = vmul.f32 %v3676_v16, %v1624_v25 }
 0x990   : > { %v1634_v23 = vpop.permute.xlu2 %1633 }
 0x991   : > { %v1639_v26 = vmul.f32 %v3667_v10, %v1634_v23 }
 0x997   : > { %v1622_v19 = vpop.permute.xlu1 %1621 }
 0x998   : > { %v1627_v28 = vmul.f32 %v3676_v16, %v1622_v19  ;;  %v1632_v35 = vpop.permute.xlu2 %1631 }
 0x999   : > { %v1638_v39 = vmul.f32 %v3667_v10, %v1632_v35 }
 0x99a   : > { %v1642_v22 = vpack.c.bf16 %v1628_v20, %v1627_v28 }
 0x99c   : > { %1702 = vmatpush.bf16.msrb.mxu3 %v1642_v22 }
 0x99f   : > { %v1620_v38 = vpop.permute.xlu1 %1619  ;;  %v1636_v33 = vpop.permute.xlu0 %1635 }
 0x9a0   : > { %v1626_v27 = vmul.f32 %v3676_v16, %v1620_v38  ;;  %v1640_v29 = vmul.f32 %v3667_v10, %v1636_v33 }
 0x9a2   : > { %v1641_v31 = vpack.c.bf16 %v1626_v27, %v1625_v43  ;;  %v1716_v32 = vpack.c.bf16 %v1640_v29, %v1639_v26 }
 0x9a4   : > { %1703 = vmatpush.bf16.msrb.mxu3 %v1641_v31  ;;  %1739 = vmatpush.bf16.msrb.mxu0 %v1716_v32 }
 0x9a7   : > { %v1630_v36 = vpop.permute.xlu1 %1629  ;;  %3031 = vmatmul.msk.bf16.vlgmr.msrb.gmra.mxu3 %vm546_vm4, %v3284_v34 }
 0x9a8   : > { %v1637_v40 = vmul.f32 %v3667_v10, %v1630_v36 }
 0x9aa   : > { %v1715_v41 = vpack.c.bf16 %v1638_v39, %v1637_v40 }
 0x9ac   : > { %1740 = vmatpush.bf16.msrb.mxu0 %v1715_v41 }
 0x9af   : > { %3041 = vmatmul.msk.bf16.vlgmr.msrb.gmra.mxu0 %vm546_vm4, %v3288_v42 }
 0x9b7   : > { %3032 = vmatmul.msk.bf16.gmra.mxu3 %vm546_vm4, %v3285_v44 }
 0x9b9   : > { %v1670_v46 = vpop.f32.mrf.mxu2 }
 0x9bf   : > { %3042 = vmatmul.msk.bf16.gmra.mxu0 %vm546_vm4, %v3289_v45 }
 0x9c1   : > { %v1672_v9 = vpop.f32.mrf.mxu2 }
 0x9c9   : > { %v1675_v50 = vpop.f32.mrf.mxu2 }
 0x9d1   : > { %v1677_v17 = vpop.f32.mrf.mxu2 }
 0xa2a   : > { %v1705_v47 = vpop.f32.mrf.mxu3 }
 0xa2b   : > { %v1706_v19 = vadd.f32 %v1705_v47, %v1670_v46 }
 0xa2c   : > { %v1742_v8 = vpop.f32.mrf.mxu0 }
 0xa2d   : > { %v1752_v23 = vadd.f32 %v1742_v8, %v1706_v19 }
 0xa32   : > { %v1707_v48 = vpop.f32.mrf.mxu3 }
 0xa33   : > { %v1708_v28 = vadd.f32 %v1707_v48, %v1672_v9 }
 0xa34   : > { %v1744_v49 = vpop.f32.mrf.mxu0 }
 0xa35   : > { %v1753_v33 = vadd.f32 %v1744_v49, %v1708_v28  ;;  %v3290_v49 = vld [vmem:[%s4381_s3 + $0x80] sm:$0xff] }
 0xa3a   : > { %v1710_v51 = vpop.f32.mrf.mxu3 }
 0xa3b   : > { %v1711_v52 = vadd.f32 %v1710_v51, %v1675_v50  ;;  %v3291_v50 = vld [vmem:[%s4381_s3 + $0x88] sm:$0xff]  ;;  %v3292_v51 = vld [vmem:[%s4381_s3 + $0x90] sm:$0xff] }
 0xa3c   : > { %v1747_v57 = vpop.f32.mrf.mxu0 }
 0xa3d   : > { %v1754_v3 = vadd.f32 %v1747_v57, %v1711_v52  ;;  %v3293_v52 = vld [vmem:[%s4381_s3 + $0x98] sm:$0xff] }
 0xa3f   : > { %v3043_v7 = vmul.f32 -1.442695, %v1754_v3 }
 0xa41   : > { %3434 = vpow2.f32 %v3043_v7  ;;  %v1039_v7 = vadd.f32 %v3867_v59, %v3771_v11 }
 0xa42   : > { %v1712_v12 = vpop.f32.mrf.mxu3 }
 0xa43   : > { %v1713_v55 = vadd.f32 %v1712_v12, %v1677_v17  ;;  %v1316_v17 = vadd.f32 %v3957_v56, %v1039_v7 }
 0xa44   : > { %v1749_v63 = vpop.f32.mrf.mxu0 }
 0xa45   : > { %v1755_v0 = vadd.f32 %v1749_v63, %v1713_v55  ;;  %v1593_v12 = vadd.f32 %v4048_v54, %v1316_v17 }
 0xa47   : > { %v3435_v4 = vpop.eup %3434  ;;  %v3044_v6 = vmul.f32 -1.442695, %v1755_v0 }
 0xa48   : > { %v1764_v21 = vadd.f32 1.0, %v3435_v4 }
 0xa49   : > { %3436 = vpow2.f32 %v3044_v6  ;;  %v1041_v6 = vadd.f32 %v3871_v61, %v3775_v13 }
 0xa4a   : > { %3438 = vrcp.f32 %v1764_v21  ;;  %v1777_v27 = vand.u32 2147483648, %v1764_v21  ;;  %vm1771_vm12 = vweird.f32 %v1764_v21  ;;  %v1775_v31 = vand.u32 2147483647, %v1764_v21 }
 0xa4c   : > { %v1778_v39 = vor.u32 1.1754944e-38, %v1777_v27  ;;  %vm1776_vm1 = vcmp.eq.f32.partialorder %v1775_v31, 8.507059e+37 }
 0xa4f   : > { %v3437_v24 = vpop.eup %3436 }
 0xa50   : > { %v3439_v15 = vpop.eup %3438  ;;  %v1765_v25 = vadd.f32 1.0, %v3437_v24 }
 0xa51   : > { %v1767_v18 = vmul.f32 %v3439_v15, %v1764_v21  ;;  %vm1772_vm11 = vweird.f32 %v3439_v15 }
 0xa52   : > { %3440 = vrcp.f32 %v1765_v25  ;;  %vm1773_vm14 = vmor %vm1771_vm12, %vm1772_vm11  ;;  %v1792_v32 = vand.u32 2147483648, %v1765_v25  ;;  %v1790_v36 = vand.u32 2147483647, %v1765_v25  ;;  %vm1786_vm0 = vweird.f32 %v1765_v25 }
 0xa53   : > { %v1768_v20 = vsub.f32 1.0, %v1767_v18  ;;  %3442 = vtanh.f32 %v1752_v23 }
 0xa54   : > { %3444 = vtanh.f32 %v1753_v33  ;;  %v1793_v42 = vor.u32 1.1754944e-38, %v1792_v32  ;;  %vm1791_vm3 = vcmp.eq.f32.partialorder %v1790_v36, 8.507059e+37 }
 0xa55   : > { %v1769_v22 = vmul.f32 %v3439_v15, %v1768_v20 }
 0xa57   : > { %v1770_v26 = vadd.f32 %v3439_v15, %v1769_v22 }
 0xa58   : > { %v3441_v38 = vpop.eup %3440 }
 0xa59   : > { %v1782_v43 = vmul.f32 %v3441_v38, %v1765_v25  ;;  %v1774_v35 = vsel %vm1773_vm14, %v3439_v15, %v1770_v26  ;;  %vm1787_vm15 = vweird.f32 %v3441_v38  ;;  %v3443_v44 = vpop.eup %3442  ;;  %vm2481_vm14 = vcmask 523264  }
 0xa5a   : > { %v1779_v41 = vsel %vm1776_vm1, %v1778_v39, %v1774_v35  ;;  %vm1788_vm2 = vmor %vm1786_vm0, %vm1787_vm15  ;;  %v3445_v46 = vpop.eup %3444 }
 0xa5b   : > { %v1783_v29 = vsub.f32 1.0, %v1782_v43  ;;  %v1796_v8 = vmul.f32 %v3443_v44, %v1779_v41 }
 0xa5d   : > { %v1784_v34 = vmul.f32 %v3441_v38, %v1783_v29 }
 0xa5f   : > { %v1785_v40 = vadd.f32 %v3441_v38, %v1784_v34 }
 0xa61   : > { %v1789_v45 = vsel %vm1788_vm2, %v3441_v38, %v1785_v40 }
 0xa62   : > { %v1794_v47 = vsel %vm1791_vm3, %v1793_v42, %v1789_v45  ;;  %v3294_v42 = vld [vmem:[%s4380_s2 + $0xf0] sm:$0xff] }
 0xa63   : > { %v1797_v9 = vmul.f32 %v3445_v46, %v1794_v47  ;;  %v3295_v46 = vld [vmem:[%s4380_s2 + $0xf8] sm:$0xff] }
 0xa65   : > { %v1807_v48 = vpack.c.bf16 %v1797_v9, %v1796_v8 }
 0xa67   : > { %1847 = vmatpush.bf16.msrb.mxu2 %v1807_v48 }
 0xa6a   : > { %3069 = vmatmul.msk.bf16.vlgmr.msrb.gmra.mxu2 %vm719_vm13, %v3290_v49 }
 0xa7a   : > { %3070 = vmatmul.msk.bf16.gmra.mxu2 %vm719_vm13, %v3291_v50 }
 0xa8a   : > { %3071 = vmatmul.msk.bf16.gmra.mxu2 %vm719_vm13, %v3292_v51 }
 0xa9a   : > { %3072 = vmatmul.msk.bf16.gmra.mxu2 %vm719_vm13, %v3293_v52 }
 0xaed   : > { %v1849_v57 = vpop.f32.mrf.mxu2 }
 0xaee   : > { %v4136_v3 = vadd.f32 %v1849_v57, %v4046_v53  ;;  %v1318_v53 = vadd.f32 %v3963_v1, %v1041_v6 }
 0xaf0   : > { %v1595_v21 = vadd.f32 %v4053_v2, %v1318_v53 }
 0xaf5   : > { %v1851_v55 = vpop.f32.mrf.mxu2 }
 0xaf6   : > { %v4142_v63 = vadd.f32 %v1851_v55, %v1593_v12 }
 0xafd   : > { %v1854_v0 = vpop.f32.mrf.mxu2 }
 0xafe   : > { %v4145_v4 = vadd.f32 %v1854_v0, %v4051_v62 }
 0xb05   : > { %v1856_v24 = vpop.f32.mrf.mxu2 }
 0xb06   : > { %v4151_v11 = vadd.f32 %v1856_v24, %v1595_v21 }
 0xb0d   : > { %v1859_v59 = vpop.f32.mrf.mxu2 }
 0xb0e   : > { %v1873_v56 = vadd.f32 %v1859_v59, %v4056_v58 }
 0xb10   : > { %v1877_v54 = vmul.f32 0.70710677, %v1873_v56 }
 0xb12   : > { %1894 = vrot.lane.b32.xlu1 %v1877_v54, %s3541_s24 }
 0xb15   : > { %v1861_v15 = vpop.f32.mrf.mxu2 }
 0xb16   : > { %v1874_v13 = vadd.f32 %v1861_v15, %v4067_v5  ;;  %v3296_v5 = vld [vmem:[%s4380_s2 + $0x100] sm:$0xff] }
 0xb18   : > { %v1878_v2 = vmul.f32 0.70710677, %v1874_v13 }
 0xb1d   : > { %v1864_v25 = vpop.f32.mrf.mxu2 }
 0xb1e   : > { %v1875_v62 = vadd.f32 %v1864_v25, %v4061_v60  ;;  %v1920_v60 = vpack.c.bf16 %v1878_v2, %v1877_v54 }
 0xb20   : > { %v1879_v18 = vmul.f32 0.70710677, %v1875_v62 }
 0xb22   : > { %1910 = vrot.lane.b32.xlu2 %v1879_v18, %s3542_s27  ;;  %1898 = vrot.lane.b32.xlu0 %v1879_v18, %s3541_s24 }
 0xb25   : > { %v1866_v61 = vpop.f32.mrf.mxu2 }
 0xb26   : > { %v1876_v1 = vadd.f32 %v1866_v61, %v4069_v14  ;;  %v3297_v14 = vld [vmem:[%s4380_s2 + $0x108] sm:$0xff] }
 0xb28   : > { %v1880_v19 = vmul.f32 0.70710677, %v1876_v1 }
 0xb2a   : > { %v1921_v58 = vpack.c.bf16 %v1880_v19, %v1879_v18  ;;  %1896 = vrot.lane.b32.xlu2 %v1878_v2, %s3541_s24  ;;  %1912 = vrot.lane.b32.xlu0 %v1880_v19, %s3542_s27 }
 0xb2b   : > { %1900 = vrot.lane.b32.xlu1 %v1880_v19, %s3541_s24  ;;  %s2624_s24 = sshll.u32 %s319_s13, 4  ;;  %s2625_s24 = int_to_ptr.vmem [resolvable:$true] %s2624_s24 }
 0xb2c   : > { %1944 = vmatpush.bf16.msra.mxu3 %v1921_v58 }
 0xb30   : > { %1945 = vmatpush.bf16.msra.mxu3 %v1920_v60 }
 0xb32   : > { %1906 = vrot.lane.b32.xlu0 %v1877_v54, %s3542_s27 }
 0xb33   : > { %1908 = vrot.lane.b32.xlu1 %v1878_v2, %s3542_s27  ;;  %3093 = vmatmul.msk.bf16.vlgmr.msra.gmra.mxu3 %vm546_vm4, %v3296_v5  ;;  %s2626_s27 = sshll.u32 %s2622_s7, 4  ;;  %s2627_s27 = int_to_ptr.hbm [resolvable:$true] %s2626_s27 }
 0xb34   : > { %s3472_s17 = sshra.s32 %s2627_s27, 4  ;;  %s3473_s17 = int_to_ptr.hbm [resolvable:$true] %s3472_s17 }
 0xb35   : > { %s3474_s20 = scalar_lea.hbm %s3473_s17, 1  ;;  %p3479_p1 = scmp.lt.s32.totalorder %s3473_s17, %s4386_s8 }
 0xb36   : > { %p3475_p12 = scmp.ne.s32.totalorder %s3473_s17, %s3474_s20  ;;  %p3480_p2 = scmp.lt.s32.totalorder %s3478_s10, %s3474_s20 }
 0xb38   : > { %p3476_p13 = pnand %p3475_p12, %p3632_p4  ;;  %p3481_p3 = por %p3480_p2, %p3479_p1 }
 0xb3a   : > { %p3477_p0 = pneg %p3476_p13 }
 0xb3c   : > { %p3482_p5 = pnand %p3481_p3, %p3477_p0 }
 0xb43   : > { %3094 = vmatmul.msk.bf16.gmra.mxu3 %vm546_vm4, %v3297_v14 }
 0xb7c   : > { %v1911_v20 = vpop.permute.xlu2 %1910 }
 0xb7d   : > { %v1916_v38 = vmul.f32 %v3825_v37, %v1911_v20 }
 0xb84   : > { %v1895_v22 = vpop.permute.xlu1 %1894  ;;  %v1897_v33 = vpop.permute.xlu2 %1896 }
 0xb85   : > { %v1902_v32 = vmul.f32 %v3819_v30, %v1895_v22  ;;  %v1903_v34 = vmul.f32 %v3819_v30, %v1897_v33 }
 0xb87   : > { %v1918_v36 = vpack.c.bf16 %v1903_v34, %v1902_v32 }
 0xb94   : > { %v1899_v28 = vpop.permute.xlu0 %1898 }
 0xb95   : > { %v1904_v27 = vmul.f32 %v3819_v30, %v1899_v28 }
 0xb9c   : > { %v1913_v23 = vpop.permute.xlu0 %1912 }
 0xb9d   : > { %v1917_v43 = vmul.f32 %v3825_v37, %v1913_v23  ;;  %v1901_v26 = vpop.permute.xlu1 %1900 }
 0xb9e   : > { %v1905_v29 = vmul.f32 %v3819_v30, %v1901_v26  ;;  %v3298_v30 = vld [vmem:[%s4380_s2 + $0x110] sm:$0xff] }
 0xb9f   : > { %v1993_v31 = vpack.c.bf16 %v1917_v43, %v1916_v38 }
 0xba0   : > { %v1919_v35 = vpack.c.bf16 %v1905_v29, %v1904_v27 }
 0xba1   : > { %2016 = vmatpush.bf16.msra.mxu1 %v1993_v31 }
 0xba2   : > { %1979 = vmatpush.bf16.msra.mxu0 %v1919_v35 }
 0xba4   : > { %v1907_v39 = vpop.permute.xlu0 %1906 }
 0xba5   : > { %v1914_v40 = vmul.f32 %v3825_v37, %v1907_v39  ;;  %v1909_v41 = vpop.permute.xlu1 %1908 }
 0xba6   : > { %v1915_v44 = vmul.f32 %v3825_v37, %v1909_v41  ;;  %1980 = vmatpush.bf16.msra.mxu0 %v1918_v36  ;;  %v3299_v37 = vld [vmem:[%s4380_s2 + $0x118] sm:$0xff]  ;;  %v3300_v41 = vld [vmem:[%s4381_s3 + $0xa0] sm:$0xff] }
 0xba8   : > { %v1992_v45 = vpack.c.bf16 %v1915_v44, %v1914_v40 }
 0xba9   : > { %3103 = vmatmul.msk.bf16.vlgmr.msra.gmra.mxu0 %vm546_vm4, %v3294_v42  ;;  %v3301_v42 = vld [vmem:[%s4381_s3 + $0xa8] sm:$0xff] }
 0xbaa   : > { %2017 = vmatpush.bf16.msra.mxu1 %v1992_v45 }
 0xbad   : > { %3113 = vmatmul.msk.bf16.vlgmr.msra.gmra.mxu1 %vm546_vm4, %v3298_v30 }
 0xbb6   : > { %v1947_v47 = vpop.f32.mrf.mxu3 }
 0xbb9   : > { %3104 = vmatmul.msk.bf16.gmra.mxu0 %vm546_vm4, %v3295_v46 }
 0xbbd   : > { %3114 = vmatmul.msk.bf16.gmra.mxu1 %vm546_vm4, %v3299_v37 }
 0xbbe   : > { %v1949_v48 = vpop.f32.mrf.mxu3 }
 0xbc6   : > { %v1952_v51 = vpop.f32.mrf.mxu3 }
 0xbce   : > { %v1954_v0 = vpop.f32.mrf.mxu3 }
 0xc26   : > { %v1982_v8 = vpop.f32.mrf.mxu0 }
 0xc27   : > { %v1983_v18 = vadd.f32 %v1982_v8, %v1947_v47 }
 0xc2a   : > { %v2019_v9 = vpop.f32.mrf.mxu1 }
 0xc2b   : > { %v2029_v2 = vadd.f32 %v2019_v9, %v1983_v18 }
 0xc2e   : > { %v1984_v49 = vpop.f32.mrf.mxu0 }
 0xc2f   : > { %v1985_v1 = vadd.f32 %v1984_v49, %v1949_v48 }
 0xc32   : > { %v2021_v50 = vpop.f32.mrf.mxu1 }
 0xc33   : > { %v2030_v58 = vadd.f32 %v2021_v50, %v1985_v1 }
 0xc36   : > { %v1987_v52 = vpop.f32.mrf.mxu0 }
 0xc37   : > { %v1988_v57 = vadd.f32 %v1987_v52, %v1952_v51 }
 0xc3a   : > { %v2024_v7 = vpop.f32.mrf.mxu1 }
 0xc3b   : > { %v2031_v17 = vadd.f32 %v2024_v7, %v1988_v57 }
 0xc3d   : > { %v3115_v12 = vmul.f32 -1.442695, %v2031_v17 }
 0xc3e   : > { %v1989_v55 = vpop.f32.mrf.mxu0 }
 0xc3f   : > { %3446 = vpow2.f32 %v3115_v12  ;;  %v1990_v6 = vadd.f32 %v1989_v55, %v1954_v0 }
 0xc42   : > { %v2026_v53 = vpop.f32.mrf.mxu1 }
 0xc43   : > { %v2032_v21 = vadd.f32 %v2026_v53, %v1990_v6 }
 0xc45   : > { %v3447_v24 = vpop.eup %3446  ;;  %v3116_v59 = vmul.f32 -1.442695, %v2032_v21 }
 0xc46   : > { %v2041_v56 = vadd.f32 1.0, %v3447_v24 }
 0xc47   : > { %3448 = vpow2.f32 %v3116_v59 }
 0xc48   : > { %3450 = vrcp.f32 %v2041_v56  ;;  %v2054_v14 = vand.u32 2147483648, %v2041_v56  ;;  %vm2048_vm6 = vweird.f32 %v2041_v56  ;;  %v2052_v28 = vand.u32 2147483647, %v2041_v56 }
 0xc4a   : > { %v2055_v43 = vor.u32 1.1754944e-38, %v2054_v14  ;;  %vm2053_vm10 = vcmp.eq.f32.partialorder %v2052_v28, 8.507059e+37  ;;  %v3314_v14 = vld [vmem:[%s4382_s4 + $0x50] sm:$0xff]  ;;  %v3315_v28 = vld [vmem:[%s4382_s4 + $0x58] sm:$0xff] }
 0xc4d   : > { %v3449_v54 = vpop.eup %3448 }
 0xc4e   : > { %v3451_v15 = vpop.eup %3450  ;;  %v2042_v25 = vadd.f32 1.0, %v3449_v54  ;;  %v3310_v54 = vld [vmem:[%s4382_s4 + $0x30] sm:$0xff] }
 0xc4f   : > { %v2044_v62 = vmul.f32 %v3451_v15, %v2041_v56  ;;  %vm2049_vm5 = vweird.f32 %v3451_v15 }
 0xc50   : > { %3452 = vrcp.f32 %v2042_v25  ;;  %vm2050_vm7 = vmor %vm2048_vm6, %vm2049_vm5  ;;  %v2069_v22 = vand.u32 2147483648, %v2042_v25  ;;  %v2067_v33 = vand.u32 2147483647, %v2042_v25  ;;  %vm2063_vm9 = vweird.f32 %v2042_v25 }
 0xc51   : > { %v2045_v13 = vsub.f32 1.0, %v2044_v62  ;;  %3454 = vtanh.f32 %v2029_v2 }
 0xc52   : > { %3456 = vtanh.f32 %v2030_v58  ;;  %v2070_v29 = vor.u32 1.1754944e-38, %v2069_v22  ;;  %vm2068_vm12 = vcmp.eq.f32.partialorder %v2067_v33, 8.507059e+37  ;;  %v3311_v58 = vld [vmem:[%s4382_s4 + $0x38] sm:$0xff] }
 0xc53   : > { %v2046_v61 = vmul.f32 %v3451_v15, %v2045_v13  ;;  %v3312_v13 = vld [vmem:[%s4382_s4 + $0x40] sm:$0xff]  ;;  %v3307_v22 = vld [vmem:[%s4382_s4 + $0x18] sm:$0xff] }
 0xc55   : > { %v2047_v5 = vadd.f32 %v3451_v15, %v2046_v61 }
 0xc56   : > { %v3453_v19 = vpop.eup %3452 }
 0xc57   : > { %v2059_v60 = vmul.f32 %v3453_v19, %v2042_v25  ;;  %v2051_v38 = vsel %vm2050_vm7, %v3451_v15, %v2047_v5  ;;  %vm2064_vm8 = vweird.f32 %v3453_v19  ;;  %v3455_v31 = vpop.eup %3454  ;;  %v3305_v5 = vld [vmem:[%s4382_s4 + $0x8] sm:$0xff] }
 0xc58   : > { %v2056_v27 = vsel %vm2053_vm10, %v2055_v43, %v2051_v38  ;;  %vm2065_vm11 = vmor %vm2063_vm9, %vm2064_vm8  ;;  %v3457_v34 = vpop.eup %3456 }
 0xc59   : > { %v2060_v20 = vsub.f32 1.0, %v2059_v60  ;;  %v2073_v36 = vmul.f32 %v3455_v31, %v2056_v27  ;;  %v3313_v60 = vld [vmem:[%s4382_s4 + $0x48] sm:$0xff] }
 0xc5b   : > { %v2061_v23 = vmul.f32 %v3453_v19, %v2060_v20  ;;  %v3306_v20 = vld [vmem:[%s4382_s4 + $0x10] sm:$0xff] }
 0xc5d   : > { %v2062_v26 = vadd.f32 %v3453_v19, %v2061_v23 }
 0xc5f   : > { %v2066_v32 = vsel %vm2065_vm11, %v3453_v19, %v2062_v26  ;;  %v3304_v19 = vld [vmem:[%s4382_s4] sm:$0xff] }
 0xc60   : > { %v2071_v35 = vsel %vm2068_vm12, %v2070_v29, %v2066_v32 }
 0xc61   : > { %v2074_v39 = vmul.f32 %v3457_v34, %v2071_v35 }
 0xc63   : > { %v2084_v40 = vpack.c.bf16 %v2074_v39, %v2073_v36 }
 0xc65   : > { %2124 = vmatpush.bf16.msrb.mxu3 %v2084_v40 }
 0xc68   : > { %3141 = vmatmul.msk.bf16.vlgmr.msrb.gmra.mxu3 %vm719_vm13, %v3300_v41 }
 0xc78   : > { %3142 = vmatmul.msk.bf16.gmra.mxu3 %vm719_vm13, %v3301_v42 }
 0xceb   : > { %v2126_v44 = vpop.f32.mrf.mxu3 }
 0xcec   : > { %v2142_v45 = vadd.f32 %v2126_v44, %v4136_v3 }
 0xcee   : > { %v2146_v30 = vmax.f32 %v2142_v45, 0.0 }
 0xcf0   : > { %2186 = vrot.lane.b32.xlu0 %v2146_v30, %s3538_s25 }
 0xcf3   : > { %v2128_v46 = vpop.f32.mrf.mxu3 }
 0xcf4   : > { %v2143_v37 = vadd.f32 %v2128_v46, %v4142_v63  ;;  %v3308_v63 = vld [vmem:[%s4382_s4 + $0x20] sm:$0xff] }
 0xcf6   : > { %v2147_v47 = vmax.f32 %v2143_v37, 0.0 }
 0xcf8   : > { %v2200_v8 = vpack.c.bf16 %v2147_v47, %v2146_v30 }
 0xcfb   : > { %v2131_v9 = vpop.f32.mrf.mxu3 }
 0xcfc   : > { %v2144_v48 = vadd.f32 %v2131_v9, %v4145_v4 }
 0xcfe   : > { %v2148_v49 = vmax.f32 %v2144_v48, 0.0 }
 0xd00   : > { %2178 = vrot.lane.b32.xlu1 %v2148_v49, %s3539_s26  ;;  %2190 = vrot.lane.b32.xlu2 %v2148_v49, %s3538_s25 }
 0xd03   : > { %v2133_v50 = vpop.f32.mrf.mxu3 }
 0xd04   : > { %v2145_v51 = vadd.f32 %v2133_v50, %v4151_v11  ;;  %v3309_v11 = vld [vmem:[%s4382_s4 + $0x28] sm:$0xff] }
 0xd06   : > { %v2149_v3 = vmax.f32 %v2145_v51, 0.0 }
 0xd08   : > { %v2201_v52 = vpack.c.bf16 %v2149_v3, %v2148_v49  ;;  %2188 = vrot.lane.b32.xlu1 %v2147_v47, %s3538_s25  ;;  %2180 = vrot.lane.b32.xlu2 %v2149_v3, %s3539_s26 }
 0xd09   : > { %2192 = vrot.lane.b32.xlu0 %v2149_v3, %s3538_s25 }
 0xd0a   : > { %2240 = vmatpush.bf16.msrb.mxu0 %v2201_v52 }
 0xd0e   : > { %2241 = vmatpush.bf16.msrb.mxu0 %v2200_v8 }
 0xd10   : > { %2174 = vrot.lane.b32.xlu2 %v2146_v30, %s3539_s26 }
 0xd11   : > { %2176 = vrot.lane.b32.xlu0 %v2147_v47, %s3539_s26  ;;  %3161 = vmatmul.msk.bf16.vlgmr.msrb.gmra.mxu0 %vm546_vm4, %v3308_v63 }
 0xd21   : > { %3162 = vmatmul.msk.bf16.gmra.mxu0 %vm546_vm4, %v3309_v11 }
 0xd31   : > { %3163 = vmatmul.msk.bf16.gmra.mxu0 %vm546_vm4, %v3310_v54 }
 0xd41   : > { %3164 = vmatmul.msk.bf16.gmra.mxu0 %vm546_vm4, %v3311_v58 }
 0xd5a   : > { %v2191_v4 = vpop.permute.xlu2 %2190 }
 0xd5b   : > { %v2196_v21 = vmul.f32 %v3667_v10, %v2191_v4 }
 0xd62   : > { %v2181_v57 = vpop.permute.xlu2 %2180  ;;  %v2187_v17 = vpop.permute.xlu0 %2186 }
 0xd63   : > { %v2185_v12 = vmul.f32 %v3676_v16, %v2181_v57  ;;  %v2194_v15 = vmul.f32 %v3667_v10, %v2187_v17 }
 0xd6a   : > { %v2175_v25 = vpop.permute.xlu2 %2174 }
 0xd6b   : > { %v2182_v61 = vmul.f32 %v3676_v16, %v2175_v25 }
 0xd72   : > { %v2179_v7 = vpop.permute.xlu1 %2178 }
 0xd73   : > { %v2184_v55 = vmul.f32 %v3676_v16, %v2179_v7 }
 0xd75   : > { %v2199_v0 = vpack.c.bf16 %v2185_v12, %v2184_v55 }
 0xd77   : > { %2301 = vmatpush.bf16.msrb.mxu1 %v2199_v0 }
 0xd7a   : > { %v2189_v6 = vpop.permute.xlu1 %2188 }
 0xd7b   : > { %v2193_v53 = vpop.permute.xlu0 %2192  ;;  %v2195_v59 = vmul.f32 %v3667_v10, %v2189_v6 }
 0xd7c   : > { %v2197_v24 = vmul.f32 %v3667_v10, %v2193_v53 }
 0xd7d   : > { %v2324_v62 = vpack.c.bf16 %v2195_v59, %v2194_v15 }
 0xd7e   : > { %v2325_v56 = vpack.c.bf16 %v2197_v24, %v2196_v21 }
 0xd80   : > { %2364 = vmatpush.bf16.msra.mxu2 %v2325_v56 }
 0xd83   : > { %v2177_v18 = vpop.permute.xlu0 %2176 }
 0xd84   : > { %v2183_v1 = vmul.f32 %v3676_v16, %v2177_v18  ;;  %2365 = vmatpush.bf16.msra.mxu2 %v2324_v62 }
 0xd86   : > { %v2198_v2 = vpack.c.bf16 %v2183_v1, %v2182_v61  ;;  %v3302_v1 = vld [vmem:[%s4381_s3 + $0xb0] sm:$0xff] }
 0xd87   : > { %3201 = vmatmul.msk.bf16.vlgmr.msra.gmra.mxu2 %vm546_vm4, %v3312_v13  ;;  %3143 = vmatmul.msk.bf16.gmra.mxu3 %vm719_vm13, %v3302_v1 }
 0xd88   : > { %2302 = vmatpush.bf16.msrb.mxu1 %v2198_v2  ;;  %v3303_v2 = vld [vmem:[%s4381_s3 + $0xb8] sm:$0xff] }
 0xd8b   : > { %3181 = vmatmul.msk.bf16.vlgmr.msrb.gmra.mxu1 %vm546_vm4, %v3304_v19 }
 0xd8e   : > { %v2243_v23 = vpop.f32.mrf.mxu0 }
 0xd96   : > { %v2245_v38 = vpop.f32.mrf.mxu0 }
 0xd97   : > { %3202 = vmatmul.msk.bf16.gmra.mxu2 %vm546_vm4, %v3313_v60  ;;  %3144 = vmatmul.msk.bf16.gmra.mxu3 %vm719_vm13, %v3303_v2  ;;  %v3318_v60 = vld [vmem:[%s4383_s5 + $0x10] sm:$0xff] }
 0xd9b   : > { %3182 = vmatmul.msk.bf16.gmra.mxu1 %vm546_vm4, %v3305_v5 }
 0xd9e   : > { %v2248_v29 = vpop.f32.mrf.mxu0 }
 0xda6   : > { %v2250_v34 = vpop.f32.mrf.mxu0 }
 0xda7   : > { %3203 = vmatmul.msk.bf16.gmra.mxu2 %vm546_vm4, %v3314_v14 }
 0xdab   : > { %3183 = vmatmul.msk.bf16.gmra.mxu1 %vm546_vm4, %v3306_v20 }
 0xdae   : > { %v2253_v45 = vpop.f32.mrf.mxu0 }
 0xdb6   : > { %v2255_v49 = vpop.f32.mrf.mxu0 }
 0xdb7   : > { %3204 = vmatmul.msk.bf16.gmra.mxu2 %vm546_vm4, %v3315_v28 }
 0xdbb   : > { %3184 = vmatmul.msk.bf16.gmra.mxu1 %vm546_vm4, %v3307_v22 }
 0xdbe   : > { %v2258_v11 = vpop.f32.mrf.mxu0 }
 0xdc6   : > { %v2260_v0 = vpop.f32.mrf.mxu0 }
 0xe08   : > { %v2304_v33 = vpop.f32.mrf.mxu1 }
 0xe09   : > { %v2305_v43 = vadd.f32 %v2304_v33, %v2243_v23  ;;  %v3319_v23 = vld [vmem:[%s4383_s5 + $0x18] sm:$0xff] }
 0xe0a   : > { %v2367_v26 = vpop.f32.mrf.mxu2 }
 0xe0b   : > { %v2387_v27 = vadd.f32 %v2367_v26, %v2305_v43 }
 0xe0d   : > { %v2395_v62 = vmax.f32 %v2387_v27, 0.0 }
 0xe10   : > { %v2306_v31 = vpop.f32.mrf.mxu1 }
 0xe11   : > { %v2307_v56 = vadd.f32 %v2306_v31, %v2245_v38 }
 0xe12   : > { %v2369_v32 = vpop.f32.mrf.mxu2 }
 0xe13   : > { %v2388_v15 = vadd.f32 %v2369_v32, %v2307_v56 }
 0xe15   : > { %v2396_v18 = vmax.f32 %v2388_v15, 0.0  ;;  %v3543_v15 = vmov 0  }
 0xe16   : > { %3384 = vset.pattern.permute.xlu2 %v3543_v15  ;;  %3385 = vset.pattern.permute.xlu0 %v3543_v15 }
 0xe17   : > { %v2467_v61 = vpack.c.bf16 %v2396_v18, %v2395_v62 }
 0xe18   : > { %v2309_v35 = vpop.f32.mrf.mxu1 }
 0xe19   : > { %v2310_v36 = vadd.f32 %v2309_v35, %v2248_v29 }
 0xe1a   : > { %v2372_v39 = vpop.f32.mrf.mxu2 }
 0xe1b   : > { %v2389_v40 = vadd.f32 %v2372_v39, %v2310_v36 }
 0xe1d   : > { %v2397_v41 = vmax.f32 %v2389_v40, 0.0 }
 0xe1f   : > { %2419 = vrot.lane.b32.xlu0 %v2397_v41, %s3539_s26 }
 0xe20   : > { %v2311_v42 = vpop.f32.mrf.mxu1 }
 0xe21   : > { %v2312_v44 = vadd.f32 %v2311_v42, %v2250_v34 }
 0xe22   : > { %v2374_v30 = vpop.f32.mrf.mxu2 }
 0xe23   : > { %v2390_v46 = vadd.f32 %v2374_v30, %v2312_v44 }
 0xe25   : > { %v2398_v37 = vmax.f32 %v2390_v46, 0.0 }
 0xe27   : > { %2421 = vrot.lane.b32.xlu1 %v2398_v37, %s3539_s26  ;;  %v2468_v13 = vpack.c.bf16 %v2398_v37, %v2397_v41 }
 0xe28   : > { %v2314_v47 = vpop.f32.mrf.mxu1 }
 0xe29   : > { %v2315_v8 = vadd.f32 %v2314_v47, %v2253_v45 }
 0xe2a   : > { %v2377_v9 = vpop.f32.mrf.mxu2 }
 0xe2b   : > { %v2391_v48 = vadd.f32 %v2377_v9, %v2315_v8 }
 0xe2d   : > { %v2399_v50 = vmax.f32 %v2391_v48, 0.0 }
 0xe2f   : > { %2447 = vrot.lane.b32.xlu1 %v2399_v50, %s3538_s25  ;;  %2423 = vrot.lane.b32.xlu2 %v2399_v50, %s3539_s26 }
 0xe30   : > { %v2316_v51 = vpop.f32.mrf.mxu1 }
 0xe31   : > { %v2317_v3 = vadd.f32 %v2316_v51, %v2255_v49 }
 0xe32   : > { %v2379_v52 = vpop.f32.mrf.mxu2 }
 0xe33   : > { %v2392_v63 = vadd.f32 %v2379_v52, %v2317_v3  ;;  %v3316_v52 = vld [vmem:[%s4383_s5] sm:$0xff] }
 0xe35   : > { %v2400_v4 = vmax.f32 %v2392_v63, 0.0 }
 0xe37   : > { %2449 = vrot.lane.b32.xlu2 %v2400_v4, %s3538_s25  ;;  %2425 = vrot.lane.b32.xlu0 %v2400_v4, %s3539_s26  ;;  %v2469_v25 = vpack.c.bf16 %v2400_v4, %v2399_v50 }
 0xe38   : > { %v2319_v57 = vpop.f32.mrf.mxu1 }
 0xe39   : > { %v2320_v7 = vadd.f32 %v2319_v57, %v2258_v11 }
 0xe3a   : > { %v2382_v17 = vpop.f32.mrf.mxu2 }
 0xe3b   : > { %v2393_v12 = vadd.f32 %v2382_v17, %v2320_v7  ;;  %v3317_v17 = vld [vmem:[%s4383_s5 + $0x8] sm:$0xff] }
 0xe3d   : > { %v2401_v55 = vmax.f32 %v2393_v12, 0.0  ;;  %v3321_v12 = vld [vmem:[%s4383_s5 + $0x28] sm:$0xff] }
 0xe3f   : > { %2451 = vrot.lane.b32.xlu0 %v2401_v55, %s3538_s25  ;;  %2427 = vrot.lane.b32.xlu1 %v2401_v55, %s3539_s26 }
 0xe40   : > { %v2321_v6 = vpop.f32.mrf.mxu1 }
 0xe41   : > { %v2322_v53 = vadd.f32 %v2321_v6, %v2260_v0 }
 0xe42   : > { %v2384_v21 = vpop.f32.mrf.mxu2 }
 0xe43   : > { %v2394_v24 = vadd.f32 %v2384_v21, %v2322_v53 }
 0xe45   : > { %v2402_v59 = vmax.f32 %v2394_v24, 0.0 }
 0xe47   : > { %v2470_v54 = vpack.c.bf16 %v2402_v59, %v2401_v55  ;;  %2445 = vrot.lane.b32.xlu0 %v2398_v37, %s3538_s25  ;;  %2453 = vrot.lane.b32.xlu1 %v2402_v59, %s3538_s25 }
 0xe48   : > { %2429 = vrot.lane.b32.xlu2 %v2402_v59, %s3539_s26 }
 0xe49   : > { %2492 = vmatpush.bf16.msra.mxu3 %v2470_v54  ;;  %v2588_v54 = vld [vmem:[#allocation2] sm:$0x1] }
 0xe4d   : > { %2493 = vmatpush.bf16.msra.mxu3 %v2469_v25 }
 0xe4f   : > { %2439 = vrot.lane.b32.xlu0 %v2395_v62, %s3538_s25  ;;  %2415 = vrot.lane.b32.xlu1 %v2395_v62, %s3539_s26 }
 0xe50   : > { %2443 = vrot.lane.b32.xlu2 %v2397_v41, %s3538_s25 }
 0xe51   : > { %2494 = vmatpush.bf16.msra.mxu3 %v2468_v13 }
 0xe55   : > { %2495 = vmatpush.bf16.msra.mxu3 %v2467_v61 }
 0xe57   : > { %2441 = vrot.lane.b32.xlu1 %v2396_v18, %s3538_s25 }
 0xe58   : > { %2417 = vrot.lane.b32.xlu2 %v2396_v18, %s3539_s26  ;;  %3213 = vmatmul.msk.bf16.vlgmr.msra.gmra.mxu3 %vm2481_vm14, %v3318_v60 }
 0xe60   : > { %2591 = vperm.xlu2 %3384, %v2588_v54  }
 0xe68   : > { %3214 = vmatmul.msk.bf16.gmra.mxu3 %vm2481_vm14, %v3319_v23 }
 0xe89   : > { %v2424_v19 = vpop.permute.xlu2 %2423 }
 0xe8a   : > { %v2435_v32 = vmul.f32 %v3676_v16, %v2424_v19 }
 0xe91   : > { %v2420_v5 = vpop.permute.xlu0 %2419  ;;  %v2450_v14 = vpop.permute.xlu2 %2449 }
 0xe92   : > { %v2433_v39 = vmul.f32 %v3676_v16, %v2420_v5  ;;  %v2460_v46 = vmul.f32 %v3667_v10, %v2450_v14 }
 0xe99   : > { %v2422_v58 = vpop.permute.xlu1 %2421 }
 0xe9a   : > { %v2434_v34 = vmul.f32 %v3676_v16, %v2422_v58 }
 0xe9c   : > { %v2464_v42 = vpack.c.bf16 %v2434_v34, %v2433_v39 }
 0xea1   : > { %v2448_v20 = vpop.permute.xlu1 %2447 }
 0xea2   : > { %v2430_v22 = vpop.permute.xlu2 %2429  ;;  %v2459_v44 = vmul.f32 %v3667_v10, %v2448_v20 }
 0xea3   : > { %v2438_v33 = vmul.f32 %v3676_v16, %v2430_v22 }
 0xea4   : > { %v2544_v47 = vpack.c.bf16 %v2460_v46, %v2459_v44 }
 0xea9   : > { %v2426_v28 = vpop.permute.xlu0 %2425 }
 0xeaa   : > { %v2436_v27 = vmul.f32 %v3676_v16, %v2426_v28  ;;  %v2444_v31 = vpop.permute.xlu2 %2443 }
 0xeab   : > { %v2457_v48 = vmul.f32 %v3667_v10, %v2444_v31 }
 0xeac   : > { %v2465_v35 = vpack.c.bf16 %v2436_v27, %v2435_v32 }
 0xeb1   : > { %v2428_v38 = vpop.permute.xlu1 %2427  ;;  %v2452_v26 = vpop.permute.xlu0 %2451 }
 0xeb2   : > { %v2437_v43 = vmul.f32 %v3676_v16, %v2428_v38  ;;  %v2461_v40 = vmul.f32 %v3667_v10, %v2452_v26  ;;  %v2418_v37 = vpop.permute.xlu2 %2417 }
 0xeb3   : > { %v2432_v49 = vmul.f32 %v3676_v16, %v2418_v37 }
 0xeb4   : > { %v2466_v29 = vpack.c.bf16 %v2438_v33, %v2437_v43  ;;  %v2585_v33 = vld [vmem:[%s4384_s6] sm:$0x1] }
 0xeb6   : > { %2527 = vmatpush.bf16.msra.mxu0 %v2466_v29 }
 0xeb9   : > { %v2454_v36 = vpop.permute.xlu1 %2453  ;;  %v2446_v30 = vpop.permute.xlu0 %2445 }
 0xeba   : > { %v2462_v41 = vmul.f32 %v3667_v10, %v2454_v36  ;;  %2528 = vmatpush.bf16.msra.mxu0 %v2465_v35  ;;  %v2458_v8 = vmul.f32 %v3667_v10, %v2446_v30  ;;  %v2592_v43 = vpop.permute.xlu2 %2591 }
 0xebb   : > { %v2594_v26 = vperm.slane %v2592_v43, 0 }
 0xebc   : > { %v2545_v45 = vpack.c.bf16 %v2462_v41, %v2461_v40  ;;  %v2543_v51 = vpack.c.bf16 %v2458_v8, %v2457_v48 }
 0xebe   : > { %2529 = vmatpush.bf16.msra.mxu0 %v2464_v42  ;;  %2566 = vmatpush.bf16.msra.mxu1 %v2545_v45 }
 0xec1   : > { %v2416_v9 = vpop.permute.xlu1 %2415  ;;  %v2440_v63 = vpop.permute.xlu0 %2439 }
 0xec2   : > { %v2431_v50 = vmul.f32 %v3676_v16, %v2416_v9  ;;  %2567 = vmatpush.bf16.msra.mxu1 %v2544_v47  ;;  %v2455_v11 = vmul.f32 %v3667_v10, %v2440_v63  ;;  %v3320_v16 = vld [vmem:[%s4383_s5 + $0x20] sm:$0xff] }
 0xec4   : > { %v2463_v3 = vpack.c.bf16 %v2432_v49, %v2431_v50 }
 0xec6   : > { %2530 = vmatpush.bf16.msra.mxu0 %v2463_v3  ;;  %2568 = vmatpush.bf16.msra.mxu1 %v2543_v51 }
 0xec9   : > { %v2442_v4 = vpop.permute.xlu1 %2441  ;;  %3223 = vmatmul.msk.bf16.vlgmr.msra.gmra.mxu0 %vm2481_vm14, %v3316_v52 }
 0xeca   : > { %v2456_v57 = vmul.f32 %v3667_v10, %v2442_v4  ;;  %v2136_v10 = vpop.f32.mrf.mxu3 }
 0xecc   : > { %v2542_v7 = vpack.c.bf16 %v2456_v57, %v2455_v11 }
 0xece   : > { %2569 = vmatpush.bf16.msra.mxu1 %v2542_v7 }
 0xed1   : > { %3233 = vmatmul.msk.bf16.vlgmr.msra.gmra.mxu1 %vm2481_vm14, %v3320_v16 }
 0xed2   : > { %v2137_v55 = vpop.f32.mrf.mxu3 }
 0xed9   : > { %3224 = vmatmul.msk.bf16.gmra.mxu0 %vm2481_vm14, %v3317_v17 }
 0xeda   : > { %v2139_v0 = vpop.f32.mrf.mxu3 }
 0xee1   : > { %3234 = vmatmul.msk.bf16.gmra.mxu1 %vm2481_vm14, %v3321_v12 }
 0xee2   : > { %v2140_v6 = vpop.f32.mrf.mxu3 }
 0xeea   : > { %v2497_v53 = vpop.f32.mrf.mxu3 }
 0xef2   : > { %v2499_v56 = vpop.f32.mrf.mxu3 }
 0xefa   : > { %v2502_v18 = vpop.f32.mrf.mxu3 }
 0xf02   : > { %v2504_v2 = vpop.f32.mrf.mxu3 }
 0xf46   : > { %v2532_v21 = vpop.f32.mrf.mxu0 }
 0xf47   : > { %v2533_v60 = vadd.f32 %v2532_v21, %v2497_v53 }
 0xf4e   : > { %v2534_v24 = vpop.f32.mrf.mxu0  ;;  %v2571_v59 = vpop.f32.mrf.mxu1 }
 0xf4f   : > { %v2535_v5 = vadd.f32 %v2534_v24, %v2499_v56  ;;  %v2581_v23 = vadd.f32 %v2571_v59, %v2533_v60 }
 0xf56   : > { %v2573_v25 = vpop.f32.mrf.mxu1  ;;  %v2537_v62 = vpop.f32.mrf.mxu0 }
 0xf57   : > { %v2538_v1 = vadd.f32 %v2537_v62, %v2502_v18  ;;  %v2582_v28 = vadd.f32 %v2573_v25, %v2535_v5 }
 0xf59   : > { %v2586_v38 = vpack.c.bf16 %v2582_v28, %v2581_v23 }
 0xf5e   : > { %v2576_v13 = vpop.f32.mrf.mxu1  ;;  %v2539_v61 = vpop.f32.mrf.mxu0 }
 0xf5f   : > { %v2540_v19 = vadd.f32 %v2539_v61, %v2504_v2  ;;  %v2583_v14 = vadd.f32 %v2576_v13, %v2538_v1 }
 0xf66   : > { %v2578_v58 = vpop.f32.mrf.mxu1 }
 0xf67   : > { %v2584_v20 = vadd.f32 %v2578_v58, %v2540_v19 }
 0xf69   : > { %v2587_v22 = vpack.c.bf16 %v2584_v20, %v2583_v14 }
 0xf6b   : > { %2604 = vmatpush.bf16.msrb.mxu2 %v2587_v22 }
 0xf6f   : > { %2605 = vmatpush.bf16.msrb.mxu2 %v2586_v38 }
 0xf72   : > { %3235 = vmatmul.msk.bf16.vlgmr.msrb.gmra.mxu2 %vm546_vm4, %v2585_v33 }
 0xff5   : > { %v2607_v27 = vpop.f32.mrf.mxu2 }
 0xff6   : > { %v2608_v29 = vadd.f32 %v2607_v27, %v2594_v26 }
 0xff8   : > { %2611 = vst [vmem:[%s319_s13] sm:$0x1] %v2608_v29 }
 0xff9   : > { %3485 = shalt.err (!%p3482_p5)
}
 0xffa   : > { %3323 = dma.vmem_to_hbm [thread:$0]  (%p3632_p4), %s2625_s24, 16, %s2627_s27, %s2613_s15  }
 0xffd   : > { %v2609_v31 = vpop.f32.mrf.mxu2 }
 0xffe PF: > { %p3329_p6 = scmp.ge.s32.totalorder %s3536_s12, 2  ;;  %s2638_s28 = sand.u32 1, %s3516_s29  }
 0xfff   : > { %s2639_s26 = scalar_lea.sflag [#allocation4], %s2638_s28 }
0x1000   : > { %p3326_p7 = pnand %p3329_p6, %p3639_p8 }
0x1002   : > { %p3327_p9 = pneg %p3326_p7 }
0x1004   : > { %3511 = dma.done.wait (%p3327_p9), %s2639_s26, 16  }
0x1005   : > { %3513 = vsyncadd (%p3327_p9), %s2639_s26, 4294967280  ;;  %s23_s12 = sadd.s32 1, %s3536_s12   ;;  %s4389_s29 = smov %s3520_s30 }
0x1006   : > { %p20_p10 = scmp.ge.s32.totalorder %s23_s12, 4   ;;  %s4390_s30 = smov %s3524_s9 }
0x1007   : > { %s4391_s9 = smov %s3645_s19  ;;  %s4392_s10 = smov %s3532_s11 }
0x1008   : > { %s4393_s11 = smov %s4395_s14  ;;  %22 = sbr.rel (!%p20_p10) target bundleno = 7 (0x7), region = 97 }
0x100d   :  { %2644 = vsyncpa [#allocation4], 1 }
0x100e   :  { %2646 = vsyncpa [#allocation4 + $0x1], 1 }

</bundles_post_ra>
